<compile_context>
chip_gen: v6e
topology: v6e:2x2x1
jax: 0.10.0
libtpu: 0.0.40
codegen_flags: <defaults>
</compile_context>

<pallas_src>
import functools

import jax
import jax.numpy as jnp
from jax.experimental import pallas as pl
from jax.experimental.pallas import tpu as pltpu


def _round_up(x, m):
    return ((x + m - 1) // m) * m


# ----------------------------------------------------------------------------
# Weight preparation (wrapper side, weights only -> negligible, done once)
# ----------------------------------------------------------------------------
def conv_w_to_matmul(w_oihw):
    """(Cout, Cin, kh, kw) -> (kh*kw*Cin, Cout), flatten order (kh, kw, Cin)."""
    Cout, Cin, kh, kw = w_oihw.shape
    return jnp.transpose(w_oihw, (2, 3, 1, 0)).reshape(kh * kw * Cin, Cout)


def fold_bn(w_flat, b, bn, eps=1e-5):
    """Fold eval-mode BatchNorm into matmul weights (per output channel)."""
    gamma, beta, mean, var = bn
    scale = gamma / jnp.sqrt(var + eps)
    return w_flat * scale, (b - mean) * scale + beta


# ----------------------------------------------------------------------------
# The fused kernel: one image per grid step, everything resident in VMEM.
# ----------------------------------------------------------------------------
def _fused_se_block_kernel(x_ref, w1_ref, w2_ref, wsc_ref, p_ref, o_ref,
                           cols1_ref, cols2_ref, ypad_ref,
                           *, stride, Ho, Wo, Cin, Cout, Cr, has_proj):
    """Refs:
      x_ref  : (1, s*s, Hq, Wq, Cin) bf16  padded, stride-phase-decomposed input
      w1_ref : (9*Cin,  Cout) bf16         conv1 weights (BN folded)
      w2_ref : (9*Cout, Cout) bf16         conv2 weights (BN folded)
      wsc_ref: (Cin,    Cout) bf16         1x1 shortcut weights (BN folded)
      p_ref  : (3+3*Cr+1, Cout) f32        [b1; b2; bsc; fc1_w; fc2_w^T; fc1_b; fc2_b]
      o_ref  : (1, S, Cout) f32            output (S = Ho*Wo), NCHW restore in wrapper
      cols1_ref / cols2_ref / ypad_ref     VMEM scratch (im2col slabs, padded y1)
    """
    s = stride
    S = Ho * Wo

    # ---- conv1: in-VMEM im2col, ONE (S, 9*Cin) x (9*Cin, Cout) MXU matmul ---
    for di in range(3):
        for dj in range(3):
            ph = (di % s) * s + (dj % s)
            tap = x_ref[0, ph, pl.ds(di // s, Ho), pl.ds(dj // s, Wo), :]
            cols1_ref[:, pl.ds((di * 3 + dj) * Cin, Cin)] = tap.reshape(S, Cin)
    y1 = jnp.dot(cols1_ref[...], w1_ref[...],
                 preferred_element_type=jnp.float32)
    y1 = jnp.maximum(y1 + p_ref[0:1, :], 0.0)          # folded-BN bias + ReLU

    # ---- stage y1 into a zero-padded VMEM scratch (pad=1 for conv2) ---------
    ypad_ref[...] = jnp.zeros_like(ypad_ref)
    ypad_ref[pl.ds(1, Ho), pl.ds(1, Wo), :] = y1.reshape(Ho, Wo, Cout)

    # ---- conv2: in-VMEM im2col, ONE (S, 9*Cout) x (9*Cout, Cout) matmul -----
    for di in range(3):
        for dj in range(3):
            tap = ypad_ref[pl.ds(di, Ho), pl.ds(dj, Wo), :]
            cols2_ref[:, pl.ds((di * 3 + dj) * Cout, Cout)] = (
                tap.reshape(S, Cout).astype(jnp.bfloat16))
    res = jnp.dot(cols2_ref[...], w2_ref[...],
                  preferred_element_type=jnp.float32)
    res = jnp.maximum(res + p_ref[1:2, :], 0.0)

    # ---- shortcut: 1x1 stride-s conv + BN (K = Cin, unpadded) or identity ---
    ph0 = (1 % s) * s + (1 % s)
    q0 = 1 // s
    xs = x_ref[0, ph0, pl.ds(q0, Ho), pl.ds(q0, Wo), :].reshape(S, Cin)
    if has_proj:
        sc = jnp.dot(xs, wsc_ref[...], preferred_element_type=jnp.float32)
        sc = sc + p_ref[2:3, :]
    else:
        sc = xs.astype(jnp.float32)

    # ---- SE: global mean -> fc1 + ReLU -> fc2 + sigmoid -> channel gate -----
    ch_mean = jnp.mean(res, axis=0, keepdims=True)                  # (1, C)
    w1f = p_ref[3:3 + Cr, :]                                        # (Cr, C)
    w2f = p_ref[3 + Cr:3 + 2 * Cr, :]                               # (Cr, C)
    b1f = p_ref[3 + 2 * Cr:3 + 3 * Cr, :]                           # (Cr, C)
    b2f = p_ref[3 + 3 * Cr:3 + 3 * Cr + 1, :]                       # (1,  C)
    h = jnp.maximum(jnp.sum(ch_mean * w1f, axis=-1, keepdims=True) + b1f, 0.0)
    gate = jax.nn.sigmoid(jnp.sum(h * w2f, axis=0, keepdims=True) + b2f)

    # ---- gate * residual + shortcut, final ReLU ------------------------------
    o_ref[0] = jnp.maximum(res * gate + sc, 0.0)


# ----------------------------------------------------------------------------
# Wrapper: fold BN, lay out input, single pallas_call, restore NCHW.
# ----------------------------------------------------------------------------
def basic_residual_se_block(x_nchw, p, stride):
    B, Cin, H, W = x_nchw.shape
    Cout = p["conv1_w"].shape[0]
    Cr = p["fc1_w"].shape[0]
    s = stride
    Ho = (H + 2 - 3) // s + 1
    Wo = (W + 2 - 3) // s + 1
    S = Ho * Wo
    has_proj = (s != 1) or (Cin != Cout)

    # fold eval-mode BN into the conv weights, reorder for in-kernel matmul
    w1, b1 = fold_bn(conv_w_to_matmul(p["conv1_w"]), p["conv1_b"], p["bn1"])
    w2, b2 = fold_bn(conv_w_to_matmul(p["conv2_w"]), p["conv2_b"], p["bn2"])
    if has_proj:
        wsc, bsc = fold_bn(conv_w_to_matmul(p["sc_w"]), p["sc_b"], p["bn_sc"])
    else:
        wsc = jnp.zeros((Cin, Cout), jnp.float32)
        bsc = jnp.zeros((Cout,), jnp.float32)

    # one small packed f32 parameter block: conv/shortcut biases + SE params
    P = jnp.concatenate([
        b1[None, :], b2[None, :], bsc[None, :],
        p["fc1_w"],                                   # (Cr, C)
        p["fc2_w"].T,                                 # (Cr, C)
        jnp.tile(p["fc1_b"][:, None], (1, Cout)),     # (Cr, C) replicated
        p["fc2_b"][None, :],                          # (1,  C)
    ], axis=0).astype(jnp.float32)

    # input: NCHW -> bf16, pad=1 halo, stride-phase decompose, channels-last
    # (one pad + one transpose; the transpose also covers NCHW -> NHWC).
    Hp, Wp = _round_up(H + 2, s), _round_up(W + 2, s)
    Hq, Wq = Hp // s, Wp // s
    xb = jnp.pad(x_nchw.astype(jnp.bfloat16),
                 ((0, 0), (0, 0), (1, Hp - H - 1), (1, Wp - W - 1)))
    xb = xb.reshape(B, Cin, Hq, s, Wq, s)
    x_ph = jnp.transpose(xb, (0, 3, 5, 2, 4, 1)).reshape(B, s * s, Hq, Wq, Cin)

    kernel = functools.partial(_fused_se_block_kernel, stride=s, Ho=Ho, Wo=Wo,
                               Cin=Cin, Cout=Cout, Cr=Cr, has_proj=has_proj)

    # TODO(synk): for large feature maps, tile spatially with a halo and repack
    # the input so the lane dim is 128-dense (Cin-minor wastes lanes); required
    # before scaling H,W on v7x's 64 MiB VMEM.
    # TODO(synk): for large B on single-TC v5e/v6e, fold several images into one
    # grid step so the matmul M dim reaches >=128; B parallel grid steps are
    # kept here so both v7x TensorCores get work.
    out = pl.pallas_call(
        kernel,
        out_shape=jax.ShapeDtypeStruct((B, S, Cout), jnp.float32),
        grid=(B,),
        in_specs=[
            pl.BlockSpec((1, s * s, Hq, Wq, Cin), lambda b: (b, 0, 0, 0, 0)),
            pl.BlockSpec((9 * Cin, Cout), lambda b: (0, 0)),
            pl.BlockSpec((9 * Cout, Cout), lambda b: (0, 0)),
            pl.BlockSpec((Cin, Cout), lambda b: (0, 0)),
            pl.BlockSpec((P.shape[0], Cout), lambda b: (0, 0)),
        ],
        out_specs=pl.BlockSpec((1, S, Cout), lambda b: (b, 0, 0)),
        scratch_shapes=[
            pltpu.VMEM((S, 9 * Cin), jnp.bfloat16),          # conv1 im2col slab
            pltpu.VMEM((S, 9 * Cout), jnp.bfloat16),         # conv2 im2col slab
            pltpu.VMEM((Ho + 2, Wo + 2, Cout), jnp.float32),  # zero-padded y1
        ],
        compiler_params=pltpu.CompilerParams(
            dimension_semantics=("parallel",),
            vmem_limit_bytes=32 * 1024 * 1024),
        cost_estimate=pl.CostEstimate(
            flops=2 * B * S * Cout * (9 * Cin + 9 * Cout + Cin),
            transcendentals=B * Cout,
            bytes_accessed=(x_ph.size * 2
                            + (9 * Cin + 9 * Cout + Cin) * Cout * 2
                            + P.size * 4 + B * S * Cout * 4)),
    )(x_ph, w1.astype(jnp.bfloat16), w2.astype(jnp.bfloat16),
      wsc.astype(jnp.bfloat16), P)

    return out.reshape(B, Ho, Wo, Cout).transpose(0, 3, 1, 2)   # back to NCHW


# ----------------------------------------------------------------------------
# Parameter init + pure-JAX reference (for correctness check)
# ----------------------------------------------------------------------------
def init_params(key, in_c, out_c, r):
    ks = jax.random.split(key, 12)
    cr = max(1, out_c // r)

    def w(k, shape, scale=0.1):
        return scale * jax.random.normal(k, shape, jnp.float32)

    def bn(k):
        k1, k2, k3, k4 = jax.random.split(k, 4)
        gamma = 1.0 + 0.1 * jax.random.normal(k1, (out_c,), jnp.float32)
        beta = 0.1 * jax.random.normal(k2, (out_c,), jnp.float32)
        mean = 0.05 * jax.random.normal(k3, (out_c,), jnp.float32)
        var = 1.0 + jnp.abs(0.1 * jax.random.normal(k4, (out_c,), jnp.float32))
        return (gamma, beta, mean, var)

    return dict(
        conv1_w=w(ks[0], (out_c, in_c, 3, 3)),
        conv1_b=w(ks[1], (out_c,)),
        bn1=bn(ks[2]),
        conv2_w=w(ks[3], (out_c, out_c, 3, 3)),
        conv2_b=w(ks[4], (out_c,)),
        bn2=bn(ks[5]),
        sc_w=w(ks[6], (out_c, in_c, 1, 1)),
        sc_b=w(ks[7], (out_c,)),
        bn_sc=bn(ks[8]),
        fc1_w=w(ks[9], (cr, out_c), 0.3),
        fc1_b=jnp.zeros((cr,), jnp.float32),
        fc2_w=w(ks[10], (out_c, cr), 0.3),
        fc2_b=jnp.zeros((out_c,), jnp.float32),
    )


def ref_forward(x, p, stride, eps=1e-5):
    def conv(x, w, b, s, pad):
        y = jax.lax.conv_general_dilated(
            x, w, (s, s), [(pad, pad), (pad, pad)],
            dimension_numbers=("NCHW", "OIHW", "NCHW"))
        return y + b[None, :, None, None]

    def bn(x, bnp):
        g, be, m, v = bnp
        return ((x - m[None, :, None, None])
                / jnp.sqrt(v[None, :, None, None] + eps)
                * g[None, :, None, None] + be[None, :, None, None])

    cin, cout = x.shape[1], p["conv1_w"].shape[0]
    y = jax.nn.relu(bn(conv(x, p["conv1_w"], p["conv1_b"], stride, 1), p["bn1"]))
    res = jax.nn.relu(bn(conv(y, p["conv2_w"], p["conv2_b"], 1, 1), p["bn2"]))
    if stride != 1 or cin != cout:
        sc = bn(conv(x, p["sc_w"], p["sc_b"], stride, 0), p["bn_sc"])
    else:
        sc = x
    sq = jnp.mean(res, axis=(2, 3))
    h = jax.nn.relu(sq @ p["fc1_w"].T + p["fc1_b"])
    e = jax.nn.sigmoid(h @ p["fc2_w"].T + p["fc2_b"])
    return jax.nn.relu(res * e[:, :, None, None] + sc)


# ----------------------------------------------------------------------------
if __name__ == "__main__":
    key = jax.random.PRNGKey(0)
    k1, k2, k3, k4 = jax.random.split(key, 4)

    # --- config 1: projection shortcut (stride=2, Cin != Cout) ---------------
    B, Cin, H, W = 2, 16, 16, 16
    Cout, stride, r = 32, 2, 16
    x = jax.random.normal(k1, (B, Cin, H, W), jnp.float32)
    params = init_params(k2, Cin, Cout, r)
    fwd = jax.jit(functools.partial(basic_residual_se_block, stride=stride))
    out = jax.block_until_ready(fwd(x, params))
    ref = ref_forward(x, params, stride)
    assert out.shape == (B, Cout, H // stride, W // stride), out.shape
    err = float(jnp.max(jnp.abs(out - ref)))
    # bf16 MXU operands (f32 accumulate) => slightly looser tolerance vs f32 ref
    assert jnp.allclose(out, ref, atol=6e-2, rtol=5e-2), err

    # --- config 2: identity shortcut (stride=1, Cin == Cout) -----------------
    x2 = jax.random.normal(k3, (B, Cout, H, W), jnp.float32)
    params2 = init_params(k4, Cout, Cout, r)
    fwd2 = jax.jit(functools.partial(basic_residual_se_block, stride=1))
    out2 = jax.block_until_ready(fwd2(x2, params2))
    ref2 = ref_forward(x2, params2, 1)
    assert out2.shape == (B, Cout, H, W), out2.shape
    err2 = float(jnp.max(jnp.abs(out2 - ref2)))
    assert jnp.allclose(out2, ref2, atol=6e-2, rtol=5e-2), err2

    print("KERNEL_OK")
</pallas_src>

<mosaic_0001>
module attributes {stable_mosaic.version = 11 : i64} {
  func.func @_fused_se_block_kernel(%arg0: i32, %arg1: memref<1x4x9x9x16xbf16, #tpu.memory_space<vmem>>, %arg2: memref<144x32xbf16, #tpu.memory_space<vmem>>, %arg3: memref<288x32xbf16, #tpu.memory_space<vmem>>, %arg4: memref<16x32xbf16, #tpu.memory_space<vmem>>, %arg5: memref<10x32xf32, #tpu.memory_space<vmem>>, %arg6: memref<1x64x32xf32, #tpu.memory_space<vmem>>, %arg7: memref<64x144xbf16, #tpu.memory_space<vmem>>, %arg8: memref<64x288xbf16, #tpu.memory_space<vmem>>, %arg9: memref<10x10x32xf32, #tpu.memory_space<vmem>>) attributes {dimension_semantics = [#tpu.dimension_semantics<parallel>], iteration_bounds = array<i64: 2>, scalar_prefetch = 0 : i64, scratch_operands = 3 : i64, tpu.core_type = #tpu.core_type<tc>, window_params = [{transform_indices = @transform_0, window_bounds = array<i64: 1, 4, 9, 9, 16>}, {pipeline_mode = #tpu.pipeline_mode<synchronous>, transform_indices = @transform_1, window_bounds = array<i64: 144, 32>}, {pipeline_mode = #tpu.pipeline_mode<synchronous>, transform_indices = @transform_2, window_bounds = array<i64: 288, 32>}, {pipeline_mode = #tpu.pipeline_mode<synchronous>, transform_indices = @transform_3, window_bounds = array<i64: 16, 32>}, {pipeline_mode = #tpu.pipeline_mode<synchronous>, transform_indices = @transform_4, window_bounds = array<i64: 10, 32>}, {transform_indices = @transform_5, window_bounds = array<i64: 1, 64, 32>}]} {
    %c0 = arith.constant 0 : index
    %c0_0 = arith.constant 0 : index
    %c0_1 = arith.constant 0 : index
    %c0_2 = arith.constant 0 : index
    %c0_3 = arith.constant 0 : index
    %0 = vector.load %arg1[%c0, %c0_0, %c0_1, %c0_2, %c0_3] : memref<1x4x9x9x16xbf16, #tpu.memory_space<vmem>>, vector<1x1x8x8x16xbf16>
    %1 = vector.shape_cast %0 : vector<1x1x8x8x16xbf16> to vector<8x8x16xbf16>
    %2 = vector.shape_cast %1 : vector<8x8x16xbf16> to vector<64x16xbf16>
    %c0_4 = arith.constant 0 : index
    %c0_5 = arith.constant 0 : index
    %3 = vector.load %arg7[%c0_4, %c0_5] : memref<64x144xbf16, #tpu.memory_space<vmem>>, vector<64x16xbf16>
    tpu.vector_store %arg7[%c0_4, %c0_5], %2 {strides = array<i32>} : memref<64x144xbf16, #tpu.memory_space<vmem>>, vector<64x16xbf16>,
    %c0_6 = arith.constant 0 : index
    %c1 = arith.constant 1 : index
    %c0_7 = arith.constant 0 : index
    %c0_8 = arith.constant 0 : index
    %c0_9 = arith.constant 0 : index
    %4 = vector.load %arg1[%c0_6, %c1, %c0_7, %c0_8, %c0_9] : memref<1x4x9x9x16xbf16, #tpu.memory_space<vmem>>, vector<1x1x8x8x16xbf16>
    %5 = vector.shape_cast %4 : vector<1x1x8x8x16xbf16> to vector<8x8x16xbf16>
    %6 = vector.shape_cast %5 : vector<8x8x16xbf16> to vector<64x16xbf16>
    %c0_10 = arith.constant 0 : index
    %c16 = arith.constant 16 : index
    %7 = vector.load %arg7[%c0_10, %c16] : memref<64x144xbf16, #tpu.memory_space<vmem>>, vector<64x16xbf16>
    tpu.vector_store %arg7[%c0_10, %c16], %6 {strides = array<i32>} : memref<64x144xbf16, #tpu.memory_space<vmem>>, vector<64x16xbf16>,
    %c0_11 = arith.constant 0 : index
    %c0_12 = arith.constant 0 : index
    %c0_13 = arith.constant 0 : index
    %c1_14 = arith.constant 1 : index
    %c0_15 = arith.constant 0 : index
    %8 = vector.load %arg1[%c0_11, %c0_12, %c0_13, %c1_14, %c0_15] : memref<1x4x9x9x16xbf16, #tpu.memory_space<vmem>>, vector<1x1x8x8x16xbf16>
    %9 = vector.shape_cast %8 : vector<1x1x8x8x16xbf16> to vector<8x8x16xbf16>
    %10 = vector.shape_cast %9 : vector<8x8x16xbf16> to vector<64x16xbf16>
    %c0_16 = arith.constant 0 : index
    %c32 = arith.constant 32 : index
    %11 = vector.load %arg7[%c0_16, %c32] : memref<64x144xbf16, #tpu.memory_space<vmem>>, vector<64x16xbf16>
    tpu.vector_store %arg7[%c0_16, %c32], %10 {strides = array<i32>} : memref<64x144xbf16, #tpu.memory_space<vmem>>, vector<64x16xbf16>,
    %c0_17 = arith.constant 0 : index
    %c2 = arith.constant 2 : index
    %c0_18 = arith.constant 0 : index
    %c0_19 = arith.constant 0 : index
    %c0_20 = arith.constant 0 : index
    %12 = vector.load %arg1[%c0_17, %c2, %c0_18, %c0_19, %c0_20] : memref<1x4x9x9x16xbf16, #tpu.memory_space<vmem>>, vector<1x1x8x8x16xbf16>
    %13 = vector.shape_cast %12 : vector<1x1x8x8x16xbf16> to vector<8x8x16xbf16>
    %14 = vector.shape_cast %13 : vector<8x8x16xbf16> to vector<64x16xbf16>
    %c0_21 = arith.constant 0 : index
    %c48 = arith.constant 48 : index
    %15 = vector.load %arg7[%c0_21, %c48] : memref<64x144xbf16, #tpu.memory_space<vmem>>, vector<64x16xbf16>
    tpu.vector_store %arg7[%c0_21, %c48], %14 {strides = array<i32>} : memref<64x144xbf16, #tpu.memory_space<vmem>>, vector<64x16xbf16>,
    %c0_22 = arith.constant 0 : index
    %c3 = arith.constant 3 : index
    %c0_23 = arith.constant 0 : index
    %c0_24 = arith.constant 0 : index
    %c0_25 = arith.constant 0 : index
    %16 = vector.load %arg1[%c0_22, %c3, %c0_23, %c0_24, %c0_25] : memref<1x4x9x9x16xbf16, #tpu.memory_space<vmem>>, vector<1x1x8x8x16xbf16>
    %17 = vector.shape_cast %16 : vector<1x1x8x8x16xbf16> to vector<8x8x16xbf16>
    %18 = vector.shape_cast %17 : vector<8x8x16xbf16> to vector<64x16xbf16>
    %c0_26 = arith.constant 0 : index
    %c64 = arith.constant 64 : index
    %19 = vector.load %arg7[%c0_26, %c64] : memref<64x144xbf16, #tpu.memory_space<vmem>>, vector<64x16xbf16>
    tpu.vector_store %arg7[%c0_26, %c64], %18 {strides = array<i32>} : memref<64x144xbf16, #tpu.memory_space<vmem>>, vector<64x16xbf16>,
    %c0_27 = arith.constant 0 : index
    %c2_28 = arith.constant 2 : index
    %c0_29 = arith.constant 0 : index
    %c1_30 = arith.constant 1 : index
    %c0_31 = arith.constant 0 : index
    %20 = vector.load %arg1[%c0_27, %c2_28, %c0_29, %c1_30, %c0_31] : memref<1x4x9x9x16xbf16, #tpu.memory_space<vmem>>, vector<1x1x8x8x16xbf16>
    %21 = vector.shape_cast %20 : vector<1x1x8x8x16xbf16> to vector<8x8x16xbf16>
    %22 = vector.shape_cast %21 : vector<8x8x16xbf16> to vector<64x16xbf16>
    %c0_32 = arith.constant 0 : index
    %c80 = arith.constant 80 : index
    %23 = vector.load %arg7[%c0_32, %c80] : memref<64x144xbf16, #tpu.memory_space<vmem>>, vector<64x16xbf16>
    tpu.vector_store %arg7[%c0_32, %c80], %22 {strides = array<i32>} : memref<64x144xbf16, #tpu.memory_space<vmem>>, vector<64x16xbf16>,
    %c0_33 = arith.constant 0 : index
    %c0_34 = arith.constant 0 : index
    %c1_35 = arith.constant 1 : index
    %c0_36 = arith.constant 0 : index
    %c0_37 = arith.constant 0 : index
    %24 = vector.load %arg1[%c0_33, %c0_34, %c1_35, %c0_36, %c0_37] : memref<1x4x9x9x16xbf16, #tpu.memory_space<vmem>>, vector<1x1x8x8x16xbf16>
    %25 = vector.shape_cast %24 : vector<1x1x8x8x16xbf16> to vector<8x8x16xbf16>
    %26 = vector.shape_cast %25 : vector<8x8x16xbf16> to vector<64x16xbf16>
    %c0_38 = arith.constant 0 : index
    %c96 = arith.constant 96 : index
    %27 = vector.load %arg7[%c0_38, %c96] : memref<64x144xbf16, #tpu.memory_space<vmem>>, vector<64x16xbf16>
    tpu.vector_store %arg7[%c0_38, %c96], %26 {strides = array<i32>} : memref<64x144xbf16, #tpu.memory_space<vmem>>, vector<64x16xbf16>,
    %c0_39 = arith.constant 0 : index
    %c1_40 = arith.constant 1 : index
    %c1_41 = arith.constant 1 : index
    %c0_42 = arith.constant 0 : index
    %c0_43 = arith.constant 0 : index
    %28 = vector.load %arg1[%c0_39, %c1_40, %c1_41, %c0_42, %c0_43] : memref<1x4x9x9x16xbf16, #tpu.memory_space<vmem>>, vector<1x1x8x8x16xbf16>
    %29 = vector.shape_cast %28 : vector<1x1x8x8x16xbf16> to vector<8x8x16xbf16>
    %30 = vector.shape_cast %29 : vector<8x8x16xbf16> to vector<64x16xbf16>
    %c0_44 = arith.constant 0 : index
    %c112 = arith.constant 112 : index
    %31 = vector.load %arg7[%c0_44, %c112] : memref<64x144xbf16, #tpu.memory_space<vmem>>, vector<64x16xbf16>
    tpu.vector_store %arg7[%c0_44, %c112], %30 {strides = array<i32>} : memref<64x144xbf16, #tpu.memory_space<vmem>>, vector<64x16xbf16>,
    %c0_45 = arith.constant 0 : index
    %c0_46 = arith.constant 0 : index
    %c1_47 = arith.constant 1 : index
    %c1_48 = arith.constant 1 : index
    %c0_49 = arith.constant 0 : index
    %32 = vector.load %arg1[%c0_45, %c0_46, %c1_47, %c1_48, %c0_49] : memref<1x4x9x9x16xbf16, #tpu.memory_space<vmem>>, vector<1x1x8x8x16xbf16>
    %33 = vector.shape_cast %32 : vector<1x1x8x8x16xbf16> to vector<8x8x16xbf16>
    %34 = vector.shape_cast %33 : vector<8x8x16xbf16> to vector<64x16xbf16>
    %c0_50 = arith.constant 0 : index
    %c128 = arith.constant 128 : index
    %35 = vector.load %arg7[%c0_50, %c128] : memref<64x144xbf16, #tpu.memory_space<vmem>>, vector<64x16xbf16>
    tpu.vector_store %arg7[%c0_50, %c128], %34 {strides = array<i32>} : memref<64x144xbf16, #tpu.memory_space<vmem>>, vector<64x16xbf16>,
    %c0_51 = arith.constant 0 : index
    %c0_52 = arith.constant 0 : index
    %36 = vector.load %arg7[%c0_51, %c0_52] : memref<64x144xbf16, #tpu.memory_space<vmem>>, vector<64x144xbf16>
    %c0_53 = arith.constant 0 : index
    %c0_54 = arith.constant 0 : index
    %37 = vector.load %arg2[%c0_53, %c0_54] : memref<144x32xbf16, #tpu.memory_space<vmem>>, vector<144x32xbf16>
    %cst = arith.constant dense<0.000000e+00> : vector<64x32xf32>
    %38 = tpu.matmul %36, %37, %cst {dimension_numbers = #tpu.dot_dimension_numbers<[1], [0], [0], [1], [0, 0, 1, 1], [], []>} : vector<64x144xbf16>, vector<144x32xbf16>, vector<64x32xf32> -> vector<64x32xf32>
    %c0_55 = arith.constant 0 : index
    %c0_56 = arith.constant 0 : index
    %39 = vector.load %arg5[%c0_55, %c0_56] : memref<10x32xf32, #tpu.memory_space<vmem>>, vector<1x32xf32>
    %40 = vector.broadcast %39 : vector<1x32xf32> to vector<64x32xf32>
    %41 = arith.addf %38, %40 : vector<64x32xf32>
    %cst_57 = arith.constant 0.000000e+00 : f32
    %42 = vector.broadcast %cst_57 : f32 to vector<64x32xf32>
    %43 = arith.maximumf %41, %42 : vector<64x32xf32>
    %cst_58 = arith.constant 0.000000e+00 : f32
    %44 = vector.broadcast %cst_58 : f32 to vector<10x10x32xf32>
    %c0_59 = arith.constant 0 : index
    %c0_60 = arith.constant 0 : index
    %c0_61 = arith.constant 0 : index
    %45 = vector.load %arg9[%c0_59, %c0_60, %c0_61] : memref<10x10x32xf32, #tpu.memory_space<vmem>>, vector<10x10x32xf32>
    tpu.vector_store %arg9[%c0_59, %c0_60, %c0_61], %44 {strides = array<i32>} : memref<10x10x32xf32, #tpu.memory_space<vmem>>, vector<10x10x32xf32>,
    %46 = vector.shape_cast %43 : vector<64x32xf32> to vector<8x8x32xf32>
    %c1_62 = arith.constant 1 : index
    %c1_63 = arith.constant 1 : index
    %c0_64 = arith.constant 0 : index
    %47 = vector.load %arg9[%c1_62, %c1_63, %c0_64] : memref<10x10x32xf32, #tpu.memory_space<vmem>>, vector<8x8x32xf32>
    tpu.vector_store %arg9[%c1_62, %c1_63, %c0_64], %46 {strides = array<i32>} : memref<10x10x32xf32, #tpu.memory_space<vmem>>, vector<8x8x32xf32>,
    %c0_65 = arith.constant 0 : index
    %c0_66 = arith.constant 0 : index
    %c0_67 = arith.constant 0 : index
    %48 = vector.load %arg9[%c0_65, %c0_66, %c0_67] : memref<10x10x32xf32, #tpu.memory_space<vmem>>, vector<8x8x32xf32>
    %49 = vector.shape_cast %48 : vector<8x8x32xf32> to vector<64x32xf32>
    %50 = arith.truncf %49 : vector<64x32xf32> to vector<64x32xbf16>
    %c0_68 = arith.constant 0 : index
    %c0_69 = arith.constant 0 : index
    %51 = vector.load %arg8[%c0_68, %c0_69] : memref<64x288xbf16, #tpu.memory_space<vmem>>, vector<64x32xbf16>
    tpu.vector_store %arg8[%c0_68, %c0_69], %50 {strides = array<i32>} : memref<64x288xbf16, #tpu.memory_space<vmem>>, vector<64x32xbf16>,
    %c0_70 = arith.constant 0 : index
    %c1_71 = arith.constant 1 : index
    %c0_72 = arith.constant 0 : index
    %52 = vector.load %arg9[%c0_70, %c1_71, %c0_72] : memref<10x10x32xf32, #tpu.memory_space<vmem>>, vector<8x8x32xf32>
    %53 = vector.shape_cast %52 : vector<8x8x32xf32> to vector<64x32xf32>
    %54 = arith.truncf %53 : vector<64x32xf32> to vector<64x32xbf16>
    %c0_73 = arith.constant 0 : index
    %c32_74 = arith.constant 32 : index
    %55 = vector.load %arg8[%c0_73, %c32_74] : memref<64x288xbf16, #tpu.memory_space<vmem>>, vector<64x32xbf16>
    tpu.vector_store %arg8[%c0_73, %c32_74], %54 {strides = array<i32>} : memref<64x288xbf16, #tpu.memory_space<vmem>>, vector<64x32xbf16>,
    %c0_75 = arith.constant 0 : index
    %c2_76 = arith.constant 2 : index
    %c0_77 = arith.constant 0 : index
    %56 = vector.load %arg9[%c0_75, %c2_76, %c0_77] : memref<10x10x32xf32, #tpu.memory_space<vmem>>, vector<8x8x32xf32>
    %57 = vector.shape_cast %56 : vector<8x8x32xf32> to vector<64x32xf32>
    %58 = arith.truncf %57 : vector<64x32xf32> to vector<64x32xbf16>
    %c0_78 = arith.constant 0 : index
    %c64_79 = arith.constant 64 : index
    %59 = vector.load %arg8[%c0_78, %c64_79] : memref<64x288xbf16, #tpu.memory_space<vmem>>, vector<64x32xbf16>
    tpu.vector_store %arg8[%c0_78, %c64_79], %58 {strides = array<i32>} : memref<64x288xbf16, #tpu.memory_space<vmem>>, vector<64x32xbf16>,
    %c1_80 = arith.constant 1 : index
    %c0_81 = arith.constant 0 : index
    %c0_82 = arith.constant 0 : index
    %60 = vector.load %arg9[%c1_80, %c0_81, %c0_82] : memref<10x10x32xf32, #tpu.memory_space<vmem>>, vector<8x8x32xf32>
    %61 = vector.shape_cast %60 : vector<8x8x32xf32> to vector<64x32xf32>
    %62 = arith.truncf %61 : vector<64x32xf32> to vector<64x32xbf16>
    %c0_83 = arith.constant 0 : index
    %c96_84 = arith.constant 96 : index
    %63 = vector.load %arg8[%c0_83, %c96_84] : memref<64x288xbf16, #tpu.memory_space<vmem>>, vector<64x32xbf16>
    tpu.vector_store %arg8[%c0_83, %c96_84], %62 {strides = array<i32>} : memref<64x288xbf16, #tpu.memory_space<vmem>>, vector<64x32xbf16>,
    %c1_85 = arith.constant 1 : index
    %c1_86 = arith.constant 1 : index
    %c0_87 = arith.constant 0 : index
    %64 = vector.load %arg9[%c1_85, %c1_86, %c0_87] : memref<10x10x32xf32, #tpu.memory_space<vmem>>, vector<8x8x32xf32>
    %65 = vector.shape_cast %64 : vector<8x8x32xf32> to vector<64x32xf32>
    %66 = arith.truncf %65 : vector<64x32xf32> to vector<64x32xbf16>
    %c0_88 = arith.constant 0 : index
    %c128_89 = arith.constant 128 : index
    %67 = vector.load %arg8[%c0_88, %c128_89] : memref<64x288xbf16, #tpu.memory_space<vmem>>, vector<64x32xbf16>
    tpu.vector_store %arg8[%c0_88, %c128_89], %66 {strides = array<i32>} : memref<64x288xbf16, #tpu.memory_space<vmem>>, vector<64x32xbf16>,
    %c1_90 = arith.constant 1 : index
    %c2_91 = arith.constant 2 : index
    %c0_92 = arith.constant 0 : index
    %68 = vector.load %arg9[%c1_90, %c2_91, %c0_92] : memref<10x10x32xf32, #tpu.memory_space<vmem>>, vector<8x8x32xf32>
    %69 = vector.shape_cast %68 : vector<8x8x32xf32> to vector<64x32xf32>
    %70 = arith.truncf %69 : vector<64x32xf32> to vector<64x32xbf16>
    %c0_93 = arith.constant 0 : index
    %c160 = arith.constant 160 : index
    %71 = vector.load %arg8[%c0_93, %c160] : memref<64x288xbf16, #tpu.memory_space<vmem>>, vector<64x32xbf16>
    tpu.vector_store %arg8[%c0_93, %c160], %70 {strides = array<i32>} : memref<64x288xbf16, #tpu.memory_space<vmem>>, vector<64x32xbf16>,
    %c2_94 = arith.constant 2 : index
    %c0_95 = arith.constant 0 : index
    %c0_96 = arith.constant 0 : index
    %72 = vector.load %arg9[%c2_94, %c0_95, %c0_96] : memref<10x10x32xf32, #tpu.memory_space<vmem>>, vector<8x8x32xf32>
    %73 = vector.shape_cast %72 : vector<8x8x32xf32> to vector<64x32xf32>
    %74 = arith.truncf %73 : vector<64x32xf32> to vector<64x32xbf16>
    %c0_97 = arith.constant 0 : index
    %c192 = arith.constant 192 : index
    %75 = vector.load %arg8[%c0_97, %c192] : memref<64x288xbf16, #tpu.memory_space<vmem>>, vector<64x32xbf16>
    tpu.vector_store %arg8[%c0_97, %c192], %74 {strides = array<i32>} : memref<64x288xbf16, #tpu.memory_space<vmem>>, vector<64x32xbf16>,
    %c2_98 = arith.constant 2 : index
    %c1_99 = arith.constant 1 : index
    %c0_100 = arith.constant 0 : index
    %76 = vector.load %arg9[%c2_98, %c1_99, %c0_100] : memref<10x10x32xf32, #tpu.memory_space<vmem>>, vector<8x8x32xf32>
    %77 = vector.shape_cast %76 : vector<8x8x32xf32> to vector<64x32xf32>
    %78 = arith.truncf %77 : vector<64x32xf32> to vector<64x32xbf16>
    %c0_101 = arith.constant 0 : index
    %c224 = arith.constant 224 : index
    %79 = vector.load %arg8[%c0_101, %c224] : memref<64x288xbf16, #tpu.memory_space<vmem>>, vector<64x32xbf16>
    tpu.vector_store %arg8[%c0_101, %c224], %78 {strides = array<i32>} : memref<64x288xbf16, #tpu.memory_space<vmem>>, vector<64x32xbf16>,
    %c2_102 = arith.constant 2 : index
    %c2_103 = arith.constant 2 : index
    %c0_104 = arith.constant 0 : index
    %80 = vector.load %arg9[%c2_102, %c2_103, %c0_104] : memref<10x10x32xf32, #tpu.memory_space<vmem>>, vector<8x8x32xf32>
    %81 = vector.shape_cast %80 : vector<8x8x32xf32> to vector<64x32xf32>
    %82 = arith.truncf %81 : vector<64x32xf32> to vector<64x32xbf16>
    %c0_105 = arith.constant 0 : index
    %c256 = arith.constant 256 : index
    %83 = vector.load %arg8[%c0_105, %c256] : memref<64x288xbf16, #tpu.memory_space<vmem>>, vector<64x32xbf16>
    tpu.vector_store %arg8[%c0_105, %c256], %82 {strides = array<i32>} : memref<64x288xbf16, #tpu.memory_space<vmem>>, vector<64x32xbf16>,
    %c0_106 = arith.constant 0 : index
    %c0_107 = arith.constant 0 : index
    %84 = vector.load %arg8[%c0_106, %c0_107] : memref<64x288xbf16, #tpu.memory_space<vmem>>, vector<64x288xbf16>
    %c0_108 = arith.constant 0 : index
    %c0_109 = arith.constant 0 : index
    %85 = vector.load %arg3[%c0_108, %c0_109] : memref<288x32xbf16, #tpu.memory_space<vmem>>, vector<288x32xbf16>
    %cst_110 = arith.constant dense<0.000000e+00> : vector<64x32xf32>
    %86 = tpu.matmul %84, %85, %cst_110 {dimension_numbers = #tpu.dot_dimension_numbers<[1], [0], [0], [1], [0, 0, 1, 1], [], []>} : vector<64x288xbf16>, vector<288x32xbf16>, vector<64x32xf32> -> vector<64x32xf32>
    %c1_111 = arith.constant 1 : index
    %c0_112 = arith.constant 0 : index
    %87 = vector.load %arg5[%c1_111, %c0_112] : memref<10x32xf32, #tpu.memory_space<vmem>>, vector<1x32xf32>
    %88 = vector.broadcast %87 : vector<1x32xf32> to vector<64x32xf32>
    %89 = arith.addf %86, %88 : vector<64x32xf32>
    %cst_113 = arith.constant 0.000000e+00 : f32
    %90 = vector.broadcast %cst_113 : f32 to vector<64x32xf32>
    %91 = arith.maximumf %89, %90 : vector<64x32xf32>
    %c0_114 = arith.constant 0 : index
    %c3_115 = arith.constant 3 : index
    %c0_116 = arith.constant 0 : index
    %c0_117 = arith.constant 0 : index
    %c0_118 = arith.constant 0 : index
    %92 = vector.load %arg1[%c0_114, %c3_115, %c0_116, %c0_117, %c0_118] : memref<1x4x9x9x16xbf16, #tpu.memory_space<vmem>>, vector<1x1x8x8x16xbf16>
    %93 = vector.shape_cast %92 : vector<1x1x8x8x16xbf16> to vector<8x8x16xbf16>
    %94 = vector.shape_cast %93 : vector<8x8x16xbf16> to vector<64x16xbf16>
    %c0_119 = arith.constant 0 : index
    %c0_120 = arith.constant 0 : index
    %95 = vector.load %arg4[%c0_119, %c0_120] : memref<16x32xbf16, #tpu.memory_space<vmem>>, vector<16x32xbf16>
    %cst_121 = arith.constant dense<0.000000e+00> : vector<64x32xf32>
    %96 = tpu.matmul %94, %95, %cst_121 {dimension_numbers = #tpu.dot_dimension_numbers<[1], [0], [0], [1], [0, 0, 1, 1], [], []>} : vector<64x16xbf16>, vector<16x32xbf16>, vector<64x32xf32> -> vector<64x32xf32>
    %c2_122 = arith.constant 2 : index
    %c0_123 = arith.constant 0 : index
    %97 = vector.load %arg5[%c2_122, %c0_123] : memref<10x32xf32, #tpu.memory_space<vmem>>, vector<1x32xf32>
    %98 = vector.broadcast %97 : vector<1x32xf32> to vector<64x32xf32>
    %99 = arith.addf %96, %98 : vector<64x32xf32>
    %cst_124 = arith.constant dense<0.000000e+00> : vector<32xf32>
    %100 = vector.multi_reduction <add>, %91, %cst_124 [0] : vector<64x32xf32> to vector<32xf32>
    %101 = vector.shape_cast %100 : vector<32xf32> to vector<1x32xf32>
    %cst_125 = arith.constant 6.400000e+01 : f32
    %102 = vector.broadcast %cst_125 : f32 to vector<1x32xf32>
    %103 = arith.divf %101, %102 : vector<1x32xf32>
    %c3_126 = arith.constant 3 : index
    %c0_127 = arith.constant 0 : index
    %104 = vector.load %arg5[%c3_126, %c0_127] : memref<10x32xf32, #tpu.memory_space<vmem>>, vector<2x32xf32>
    %c5 = arith.constant 5 : index
    %c0_128 = arith.constant 0 : index
    %105 = vector.load %arg5[%c5, %c0_128] : memref<10x32xf32, #tpu.memory_space<vmem>>, vector<2x32xf32>
    %c7 = arith.constant 7 : index
    %c0_129 = arith.constant 0 : index
    %106 = vector.load %arg5[%c7, %c0_129] : memref<10x32xf32, #tpu.memory_space<vmem>>, vector<2x32xf32>
    %c9 = arith.constant 9 : index
    %c0_130 = arith.constant 0 : index
    %107 = vector.load %arg5[%c9, %c0_130] : memref<10x32xf32, #tpu.memory_space<vmem>>, vector<1x32xf32>
    %108 = vector.broadcast %103 : vector<1x32xf32> to vector<2x32xf32>
    %109 = arith.mulf %108, %104 : vector<2x32xf32>
    %cst_131 = arith.constant dense<0.000000e+00> : vector<2xf32>
    %110 = vector.multi_reduction <add>, %109, %cst_131 [1] : vector<2x32xf32> to vector<2xf32>
    %111 = vector.shape_cast %110 : vector<2xf32> to vector<2x1xf32>
    %112 = vector.broadcast %111 : vector<2x1xf32> to vector<2x32xf32>
    %113 = arith.addf %112, %106 : vector<2x32xf32>
    %cst_132 = arith.constant 0.000000e+00 : f32
    %114 = vector.broadcast %cst_132 : f32 to vector<2x32xf32>
    %115 = arith.maximumf %113, %114 : vector<2x32xf32>
    %116 = arith.mulf %115, %105 : vector<2x32xf32>
    %cst_133 = arith.constant dense<0.000000e+00> : vector<32xf32>
    %117 = vector.multi_reduction <add>, %116, %cst_133 [0] : vector<2x32xf32> to vector<32xf32>
    %118 = vector.shape_cast %117 : vector<32xf32> to vector<1x32xf32>
    %119 = arith.addf %118, %107 : vector<1x32xf32>
    %120 = arith.negf %119 : vector<1x32xf32>
    %121 = math.exp %120 : vector<1x32xf32>
    %cst_134 = arith.constant 1.000000e+00 : f32
    %122 = vector.broadcast %cst_134 : f32 to vector<1x32xf32>
    %123 = arith.addf %122, %121 : vector<1x32xf32>
    %124 = arith.divf %122, %123 : vector<1x32xf32>
    %125 = vector.broadcast %124 : vector<1x32xf32> to vector<64x32xf32>
    %126 = arith.mulf %91, %125 : vector<64x32xf32>
    %127 = arith.addf %126, %99 : vector<64x32xf32>
    %cst_135 = arith.constant 0.000000e+00 : f32
    %128 = vector.broadcast %cst_135 : f32 to vector<64x32xf32>
    %129 = arith.maximumf %127, %128 : vector<64x32xf32>
    %c0_136 = arith.constant 0 : index
    %c0_137 = arith.constant 0 : index
    %c0_138 = arith.constant 0 : index
    %130 = vector.load %arg6[%c0_136, %c0_137, %c0_138] : memref<1x64x32xf32, #tpu.memory_space<vmem>>, vector<1x64x32xf32>
    %131 = vector.shape_cast %130 : vector<1x64x32xf32> to vector<64x32xf32>
    %132 = vector.shape_cast %129 : vector<64x32xf32> to vector<1x64x32xf32>
    tpu.vector_store %arg6[%c0_136, %c0_137, %c0_138], %132 {strides = array<i32>} : memref<1x64x32xf32, #tpu.memory_space<vmem>>, vector<1x64x32xf32>,
    return
  }
  func.func @transform_0(%arg0: i32) -> (i32, i32, i32, i32, i32) {
    %c0_i32 = arith.constant 0 : i32
    %c0_i32_0 = arith.constant 0 : i32
    %c0_i32_1 = arith.constant 0 : i32
    %c0_i32_2 = arith.constant 0 : i32
    %c0_i32_3 = arith.constant 0 : i32
    return %arg0, %c0_i32, %c0_i32_0, %c0_i32_1, %c0_i32_2 : i32, i32, i32, i32, i32
  }
  func.func @transform_1(%arg0: i32) -> (i32, i32) {
    %c0_i32 = arith.constant 0 : i32
    %c0_i32_0 = arith.constant 0 : i32
    %c0_i32_1 = arith.constant 0 : i32
    return %c0_i32, %c0_i32_0 : i32, i32
  }
  func.func @transform_2(%arg0: i32) -> (i32, i32) {
    %c0_i32 = arith.constant 0 : i32
    %c0_i32_0 = arith.constant 0 : i32
    %c0_i32_1 = arith.constant 0 : i32
    return %c0_i32, %c0_i32_0 : i32, i32
  }
  func.func @transform_3(%arg0: i32) -> (i32, i32) {
    %c0_i32 = arith.constant 0 : i32
    %c0_i32_0 = arith.constant 0 : i32
    %c0_i32_1 = arith.constant 0 : i32
    return %c0_i32, %c0_i32_0 : i32, i32
  }
  func.func @transform_4(%arg0: i32) -> (i32, i32) {
    %c0_i32 = arith.constant 0 : i32
    %c0_i32_0 = arith.constant 0 : i32
    %c0_i32_1 = arith.constant 0 : i32
    return %c0_i32, %c0_i32_0 : i32, i32
  }
  func.func @transform_5(%arg0: i32) -> (i32, i32, i32) {
    %c0_i32 = arith.constant 0 : i32
    %c0_i32_0 = arith.constant 0 : i32
    %c0_i32_1 = arith.constant 0 : i32
    return %arg0, %c0_i32, %c0_i32_0 : i32, i32, i32
  }
}

</mosaic_0001>

<bundles_post_ra>
// kernel: basic_residual_se_block.1
= control target key start
LH: loop header
LB: loop body
LE: loop exit
PB: predicated region body
PF: predicated region fallthrough
CT: control target
= control target key end

     0   :  { %10 = vsyncpa [#allocation6], 0  ;;  %s3775_s0 = inlined_call_operand.vmem [shape: bf16[2,4,9,9,16], index: 0, kind: input, shape index: {}]   ;;  %s3776_s1 = inlined_call_operand.vmem [shape: bf16[144,32], index: 1, kind: input, shape index: {}]   ;;  %s3777_s2 = inlined_call_operand.vmem [shape: bf16[288,32], index: 2, kind: input, shape index: {}]   ;;  %s3778_s3 = inlined_call_operand.vmem [shape: bf16[16,32], index: 3, kind: input, shape index: {}]   ;;  %s3779_s4 = inlined_call_operand.vmem [shape: f32[10,32], index: 4, kind: input, shape index: {}]   ;;  %s3780_s5 = inlined_call_operand.hbm [shape: f32[2,64,32], index: 5, kind: output, shape index: {}]  }
   0x1   :  { %12 = vsyncpa [#allocation6 + $0x1], 0  ;;  %s2976_s18 = smov 0   ;;  %s2978_s19 = smov 0  }
   0x2   :  { %s2980_s20 = smov 0   ;;  %s2982_s21 = smov 0  }
   0x3 LB: > { %s2997_s22 = sadd.s32 4294967295, %s2932_s21   ;;  %s2384_s23 = sadd.s32 4294967294, %s2932_s21   ;;  %s2932_s21 = sphi %s2982_s21, %s3788_s21   ;;  %s2928_s20 = sphi %s2980_s20, %s3787_s20   ;;  %s2924_s19 = sphi %s2978_s19, %s3786_s19   ;;  %s2920_s18 = sphi %s2976_s18, %s3785_s18  }
   0x4   : > { %s3001_s24 = sadd.s32 1, %s2932_s21   ;;  %s135_s25 = sadd.s32 1, %s2928_s20 }
   0x5   : > { %s132_s26 = ssub.s32 %s2932_s21, %s3001_s24  ;;  %p145_p0 = scmp.ne.s32.totalorder %s2928_s20, %s2924_s19 }
   0x6   : > { %p133_p1 = scmp.eq.s32.totalorder %s132_s26, 0  ;;  %p146_p2 = scmp.eq.s32.totalorder %s2997_s22, 1 }
   0x7   : > { %p151_p3 = scmp.ne.s32.totalorder %s2924_s19, %s2920_s18  ;;  %p152_p4 = scmp.eq.s32.totalorder %s2384_s23, 1 }
   0x8   : > { %s3012_s27 = scalar_select %p133_p1, %s2928_s20, %s135_s25  }
   0x9   : > { %p3014_p5 = por %p146_p2, %p145_p0  ;;  %p3018_p6 = por %p152_p4, %p151_p3 }
   0xa   : > { %p2387_p7 = scmp.ge.s32.totalorder %s2932_s21, 1  ;;  %p190_p8 = scmp.lt.s32.totalorder %s2932_s21, 3 }
   0xc   : > { %p191_p9 = pnand %p2387_p7, %p190_p8 }
   0xd   : > { %p218_p10 = scmp.lt.s32.totalorder (!%p191_p9), %s2997_s22, 1  ;;  %s2935_s16 = smov (!%p191_p9), 48  }
   0xe   : > { %194 = sbr.rel (%p191_p9) target bundleno = 1073 (0x431), region = 40  ;;  %s2936_s17 = smov (!%p191_p9), 16  }
   0xf   : > { %s2937_s26 = smov (!%p191_p9), 64   ;;  %s2939_s12 = smov (!%p191_p9), 80  }
  0x10   : > { %s2940_s23 = smov (!%p191_p9), 96   ;;  %s2941_s6 = smov (!%p191_p9), 112  }
  0x11   : > { %s215_s30 = sand.u32 (!%p191_p9), 1, %s2924_s19   ;;  %s2943_s11 = smov (!%p191_p9), [#allocation5]  }
  0x13   : > { %v2812_v0 = vld [vmem:[%s3776_s1 + $0x38] sm:$0xff]   ;;  %s219_s7 = scalar_select %p218_p10, %s2997_s22, 1  ;;  %v2934_v1 = vmov 0   ;;  %v2813_v2 = vld [vmem:[%s3776_s1 + $0x30] sm:$0xff]   ;;  %vm307_vm0 = vsmask.f32 3328 }
  0x14   : > { %1094 = vmatprep.subr.bf16.mxu0 %v2934_v1  ;;  %vm308_vm1 = vsmask.f32 7440  ;;  %v2814_v5 = vld [vmem:[%s3776_s1 + $0x28] sm:$0xff]   ;;  %v2815_v15 = vld [vmem:[%s3776_s1 + $0x20] sm:$0xff]   ;;  %v2816_v40 = vld [vmem:[%s3776_s1 + $0x18] sm:$0xff]   ;;  %vm232_vm3 = vcmask 125952  }
  0x15   : > { %1095 = vmatpush1.bf16.msra.mxu0 %v2812_v0  ;;  %s2761_s10 = smul.u32 288, %s219_s7  ;;  %vm3065_vm2 = vmor %vm307_vm0, %vm308_vm1  ;;  %s2938_s7 = smov 32   ;;  %v2817_v54 = vld [vmem:[%s3776_s1 + $0x10] sm:$0xff]   ;;  %v2818_v0 = vld [vmem:[%s3776_s1 + $0x8] sm:$0xff]   ;;  %vm282_vm4 = vcmask 257152   ;;  %vm446_vm5 = vcmask 388352  }
  0x16   : > { %1096 = vmatprep.subr.bf16.mxu0 %v2934_v1  ;;  %vm496_vm6 = vcmask 519552   ;;  %vm546_vm7 = vcmask 650752   ;;  %vm707_vm8 = vcmask 781952   ;;  %vm757_vm9 = vcmask 913152  }
  0x17   : > { %s3037_s13 = scalar_lea.vmem %s3775_s0, %s2761_s10  ;;  %vm807_vm10 = vcmask 1044352   ;;  %vm1081_vm11 = vcmask 130048   ;;  %vm1167_vm12 = vcmask 261120   ;;  %vm1169_vm13 = vcmask 254976  }
  0x18   : > { %v2399_v3 = vld [vmem:[%s3037_s13 + $0x98] sm:$0xf]  ;;  %v2390_v4 = vld [vmem:[%s3037_s13 + $0x48] sm:$0xf]  ;;  %v2407_v6 = vld [vmem:[%s3037_s13 + $0xe0] sm:$0xf] }
  0x19   : > { %1097 = vmatpush1.bf16.msra.mxu0 %v2813_v2  ;;  %474 = vrot.lane.b32.xlu1 %v2399_v3, %s2935_s16  ;;  %v291_v7 = vld [vmem:[%s3037_s13] sm:$0xf]  ;;  %v2391_v8 = vld [vmem:[%s3037_s13 + $0x50] sm:$0xf]  ;;  %v292_v9 = vld [vmem:[%s3037_s13 + $0x4] sm:$0x1] }
  0x1a   : > { %258 = vrot.lane.b32.xlu0 %v2390_v4, %s2936_s17  ;;  %v311_v10 = vshrl.u32 %v291_v7, 16  ;;  %v314_v11 = vshll.u32 %v291_v7, 16  ;;  %1098 = vmatprep.subr.bf16.mxu0 %v2934_v1  ;;  %v320_v12 = vshll.u32 %v292_v9, 16  ;;  %v293_v13 = vld [vmem:[%s3037_s13 + $0x8] sm:$0xf]  ;;  %v2819_v9 = vld [vmem:[%s3776_s1] sm:$0xff]  }
  0x1b   : > { %v294_v14 = vld [vmem:[%s3037_s13 + $0xc] sm:$0x1]  ;;  %v2398_v18 = vld [vmem:[%s3037_s13 + $0x90] sm:$0xf]  ;;  %v325_v19 = vshrl.u32 %v293_v13, 16  ;;  %v328_v20 = vshll.u32 %v293_v13, 16 }
  0x1c   : > { %v313_v16 = vrot.slane %v311_v10, 4  ;;  %v316_v17 = vrot.slane %v314_v11, 5  ;;  %v322_v21 = vrot.slane %v320_v12, 5  ;;  %v334_v22 = vshll.u32 %v294_v14, 16  ;;  %v2416_v23 = vld [vmem:[%s3037_s13 + $0x98] sm:$0xf] }
  0x1d   : > { %1099 = vmatpush1.bf16.msra.mxu0 %v2814_v5  ;;  %524 = vrot.lane.b32.xlu1 %v2407_v6, %s2937_s26  ;;  %v2417_v24 = vld [vmem:[%s3037_s13 + $0x9c] sm:$0x1]  ;;  %v327_v26 = vrot.slane %v325_v19, 4  ;;  %v330_v27 = vrot.slane %v328_v20, 5  ;;  %v586_v28 = vshrl.u32 %v2416_v23, 16  ;;  %v589_v32 = vshll.u32 %v2416_v23, 16 }
  0x1e   : > { %260 = vrot.lane.b32.xlu0 %v2391_v8, %s2936_s17  ;;  %v317_v25 = vor.u32 %v316_v17, %v313_v16  ;;  %v2414_v29 = vld [vmem:[%s3037_s13 + $0x90] sm:$0xf]  ;;  %1100 = vmatprep.subr.bf16.mxu0 %v2934_v1  ;;  %v336_v31 = vrot.slane %v334_v22, 5  ;;  %v595_v33 = vshll.u32 %v2417_v24, 16  ;;  %v2415_v34 = vld [vmem:[%s3037_s13 + $0x94] sm:$0x1] }
  0x1f   : > { %v572_v35 = vshrl.u32 %v2414_v29, 16  ;;  %v331_v37 = vor.u32 %v330_v27, %v327_v26  ;;  %v588_v38 = vrot.slane %v586_v28, 4  ;;  %v575_v39 = vshll.u32 %v2414_v29, 16  ;;  %v2406_v46 = vld [vmem:[%s3037_s13 + $0xd8] sm:$0xf]  ;;  %v2820_v19 = vld [vmem:[%s3776_s1 + $0x40] sm:$0xff]  }
  0x20   : > { %v318_v36 = vrot.slane %v317_v25, 4  ;;  %v591_v41 = vrot.slane %v589_v32, 5  ;;  %v581_v43 = vshll.u32 %v2415_v34, 16  ;;  %v597_v50 = vrot.slane %v595_v33, 5  ;;  %v295_v53 = vld [vmem:[%s3037_s13 + $0x10] sm:$0xf] }
  0x21   : > { %1101 = vmatpush1.bf16.msra.mxu0 %v2815_v15  ;;  %v574_v42 = vrot.slane %v572_v35, 4  ;;  %v332_v45 = vrot.slane %v331_v37, 4  ;;  %v577_v47 = vrot.slane %v575_v39, 5  ;;  %v297_v56 = vld [vmem:[%s3037_s13 + $0x18] sm:$0xf]  ;;  %v339_v58 = vshrl.u32 %v295_v53, 16 }
  0x22   : > { %472 = vrot.lane.b32.xlu0 %v2398_v18, %s2935_s16  ;;  %1102 = vmatprep.subr.bf16.mxu0 %v2934_v1  ;;  %v323_v44 = vsel %vm3065_vm2, %v318_v36, %v322_v21  ;;  %v592_v48 = vor.u32 %v591_v41, %v588_v38  ;;  %v583_v52 = vrot.slane %v581_v43, 5  ;;  %v342_v59 = vshll.u32 %v295_v53, 16  ;;  %v2430_v2 = vld [vmem:[%s3037_s13 + $0x8] sm:$0xf]  ;;  %v296_v5 = vld [vmem:[%s3037_s13 + $0x14] sm:$0x1] }
  0x23   : > { %422 = vrot.lane.b32.xlu1 %v323_v44, %s2938_s7  ;;  %v337_v49 = vsel %vm3065_vm2, %v332_v45, %v336_v31  ;;  %v578_v51 = vor.u32 %v577_v47, %v574_v42  ;;  %v353_v62 = vshrl.u32 %v297_v56, 16  ;;  %v356_v63 = vshll.u32 %v297_v56, 16  ;;  %v2431_v6 = vld [vmem:[%s3037_s13 + $0x10] sm:$0xf]  ;;  %v298_v10 = vld [vmem:[%s3037_s13 + $0x1c] sm:$0x1] }
  0x24   : > { %v593_v55 = vrot.slane %v592_v48, 4  ;;  %v341_v3 = vrot.slane %v339_v58, 4  ;;  %v344_v4 = vrot.slane %v342_v59, 5  ;;  %v2438_v11 = vld [vmem:[%s3037_s13 + $0x50] sm:$0xf]  ;;  %v348_v13 = vshll.u32 %v296_v5, 16 }
  0x25   : > { %1103 = vmatpush1.bf16.msra.mxu0 %v2816_v40  ;;  %v579_v57 = vrot.slane %v578_v51, 4  ;;  %v355_v7 = vrot.slane %v353_v62, 4  ;;  %v358_v8 = vrot.slane %v356_v63, 5  ;;  %v2418_v14 = vld [vmem:[%s3037_s13 + $0xa0] sm:$0xf]  ;;  %v362_v17 = vshll.u32 %v298_v10, 16 }
  0x26   : > { %522 = vrot.lane.b32.xlu0 %v2406_v46, %s2937_s26  ;;  %1104 = vmatprep.subr.bf16.mxu0 %v2934_v1  ;;  %v598_v60 = vsel %vm3065_vm2, %v593_v55, %v597_v50  ;;  %v345_v12 = vor.u32 %v344_v4, %v341_v3  ;;  %v2439_v15 = vld [vmem:[%s3037_s13 + $0x58] sm:$0xf]  ;;  %v2420_v18 = vld [vmem:[%s3037_s13 + $0xa8] sm:$0xf]  ;;  %v350_v22 = vrot.slane %v348_v13, 5  ;;  %v600_v23 = vshrl.u32 %v2418_v14, 16 }
  0x27   : > { %424 = vrot.lane.b32.xlu1 %v337_v49, %s2938_s7  ;;  %v584_v61 = vsel %vm3065_vm2, %v579_v57, %v583_v52  ;;  %v359_v16 = vor.u32 %v358_v8, %v355_v7  ;;  %v2392_v20 = vld [vmem:[%s3037_s13 + $0x58] sm:$0xf]  ;;  %v603_v24 = vshll.u32 %v2418_v14, 16  ;;  %v614_v25 = vshrl.u32 %v2420_v18, 16  ;;  %v2393_v27 = vld [vmem:[%s3037_s13 + $0x60] sm:$0xf] }
  0x28   : > { %v346_v21 = vrot.slane %v345_v12, 4  ;;  %v617_v26 = vshll.u32 %v2420_v18, 16  ;;  %v364_v29 = vrot.slane %v362_v17, 5  ;;  %v602_v32 = vrot.slane %v600_v23, 4  ;;  %v299_v34 = vld [vmem:[%s3037_s13 + $0x20] sm:$0xf] }
  0x29   : > { %1105 = vmatpush1.bf16.msra.mxu0 %v2817_v54  ;;  %v360_v28 = vrot.slane %v359_v16, 4  ;;  %v605_v33 = vrot.slane %v603_v24, 5  ;;  %v2424_v35 = vld [vmem:[%s3037_s13 + $0xb8] sm:$0xf]  ;;  %v616_v36 = vrot.slane %v614_v25, 4  ;;  %v367_v44 = vshrl.u32 %v299_v34, 16 }
  0x2a   : > { %683 = vrot.lane.b32.xlu0 %v584_v61, %s2939_s12  ;;  %1106 = vmatprep.subr.bf16.mxu0 %v2934_v1  ;;  %v351_v31 = vsel %vm3065_vm2, %v346_v21, %v350_v22  ;;  %v619_v37 = vrot.slane %v617_v26, 5  ;;  %v2419_v38 = vld [vmem:[%s3037_s13 + $0xa4] sm:$0x1]  ;;  %v2421_v40 = vld [vmem:[%s3037_s13 + $0xac] sm:$0x1]  ;;  %v370_v45 = vshll.u32 %v299_v34, 16 }
  0x2b   : > { %685 = vrot.lane.b32.xlu1 %v598_v60, %s2939_s12  ;;  %v365_v39 = vsel %vm3065_vm2, %v360_v28, %v364_v29  ;;  %v2422_v43 = vld [vmem:[%s3037_s13 + $0xb0] sm:$0xf]  ;;  %v642_v46 = vshrl.u32 %v2424_v35, 16  ;;  %v645_v47 = vshll.u32 %v2424_v35, 16  ;;  %v2400_v48 = vld [vmem:[%s3037_s13 + $0xa0] sm:$0xf]  ;;  %v606_v49 = vor.u32 %v605_v33, %v602_v32 }
  0x2c   : > { %v609_v50 = vshll.u32 %v2419_v38, 16  ;;  %v2401_v51 = vld [vmem:[%s3037_s13 + $0xa8] sm:$0xf]  ;;  %v620_v52 = vor.u32 %v619_v37, %v616_v36  ;;  %v623_v53 = vshll.u32 %v2421_v40, 16  ;;  %v628_v54 = vshrl.u32 %v2422_v43, 16 }
  0x2d   : > { %1107 = vmatpush1.bf16.msra.mxu0 %v2818_v0  ;;  %v631_v55 = vshll.u32 %v2422_v43, 16  ;;  %v302_v56 = vld [vmem:[%s3037_s13 + $0x2c] sm:$0x1]  ;;  %v300_v59 = vld [vmem:[%s3037_s13 + $0x24] sm:$0x1]  ;;  %v369_v60 = vrot.slane %v367_v44, 4 }
  0x2e   : > { %733 = vrot.lane.b32.xlu0 %v2430_v2, %s2940_s23  ;;  %1108 = vmatprep.subr.bf16.mxu0 %v2934_v1  ;;  %v372_v61 = vrot.slane %v370_v45, 5  ;;  %v2425_v62 = vld [vmem:[%s3037_s13 + $0xbc] sm:$0x1]  ;;  %v644_v63 = vrot.slane %v642_v46, 4  ;;  %v647_v0 = vrot.slane %v645_v47, 5  ;;  %v607_v3 = vrot.slane %v606_v49, 4 }
  0x2f   : > { %735 = vrot.lane.b32.xlu1 %v2431_v6, %s2940_s23  ;;  %v2408_v2 = vld [vmem:[%s3037_s13 + $0xe8] sm:$0xf]  ;;  %v611_v4 = vrot.slane %v609_v50, 5  ;;  %v2423_v5 = vld [vmem:[%s3037_s13 + $0xb4] sm:$0x1]  ;;  %v621_v6 = vrot.slane %v620_v52, 4 }
  0x30   : > { %v625_v7 = vrot.slane %v623_v53, 5  ;;  %v630_v8 = vrot.slane %v628_v54, 4  ;;  %v2409_v10 = vld [vmem:[%s3037_s13 + $0xf0] sm:$0xf]  ;;  %v390_v12 = vshll.u32 %v302_v56, 16  ;;  %v376_v13 = vshll.u32 %v300_v59, 16 }
  0x31   : > { %1109 = vmatpush1.bf16.msra.mxu0 %v2819_v9  ;;  %v633_v9 = vrot.slane %v631_v55, 5  ;;  %v651_v14 = vshll.u32 %v2425_v62, 16  ;;  %v648_v16 = vor.u32 %v647_v0, %v644_v63  ;;  %v637_v17 = vshll.u32 %v2423_v5, 16  ;;  %v2432_v26 = vld [vmem:[%s3037_s13 + $0x18] sm:$0xf] }
  0x32   : > { %783 = vrot.lane.b32.xlu0 %v2438_v11, %s2941_s6  ;;  %1124 = vmatprep.subr.bf16.mxu0 %v2934_v1  ;;  %v301_v1 = vld [vmem:[%s3037_s13 + $0x28] sm:$0xf]  ;;  %v612_v18 = vsel %vm3065_vm2, %v607_v3, %v611_v4  ;;  %v3156_v23 = vrot.slane %v390_v12, 5  ;;  %v3158_v24 = vrot.slane %v376_v13, 5  ;;  %v3173_v32 = vld [vmem:[%s3037_s13 + $0x30] sm:$0xf] }
  0x33   : > { %785 = vrot.lane.b32.xlu1 %v2439_v15, %s2941_s6  ;;  %v381_v41 = vshrl.u32 %v301_v1, 16  ;;  %v384_v42 = vshll.u32 %v301_v1, 16  ;;  %v373_v15 = vor.u32 %v372_v61, %v369_v60  ;;  %v634_v21 = vor.u32 %v633_v9, %v630_v8  ;;  %v224_v33 = vld [vmem:[%s3037_s13] sm:$0xf]  ;;  %v225_v34 = vld [vmem:[%s3037_s13 + $0x8] sm:$0xf] }
  0x34   : > { %v3160_v25 = vrot.slane %v651_v14, 5  ;;  %v3166_v28 = vrot.slane %v648_v16, 4  ;;  %v3168_v29 = vrot.slane %v637_v17, 5  ;;  %233 = vst.msk [vmem:[#allocation2] sm:$0xf] %vm232_vm3, %v224_v33  ;;  %vm1238_vm14 = vcmask 257024  }
  0x35   : > { %1125 = vmatpush2.bf16.msra.mxu0 %v2820_v19  ;;  %v383_v57 = vrot.slane %v381_v41, 4  ;;  %v386_v58 = vrot.slane %v384_v42, 5  ;;  %v3149_v19 = vld [vmem:[%s3037_s13 + $0x38] sm:$0xf]  ;;  %v3178_v35 = vrot.slane %v634_v21, 4  ;;  %v395_v41 = vshrl.u32 %v3173_v32, 16 }
  0x36   : > { %262 = vrot.lane.b32.xlu0 %v2392_v20, %s2936_s17  ;;  %v626_v20 = vsel %vm3065_vm2, %v621_v6, %v625_v7  ;;  %v409_v1 = vshrl.u32 %v3149_v19, 16  ;;  %v412_v36 = vshll.u32 %v3149_v19, 16  ;;  %234 = vst.msk [vmem:[#allocation2 + $0x8] sm:$0xf] %vm232_vm3, %v225_v34  ;;  %v2440_v37 = vld [vmem:[%s3037_s13 + $0x60] sm:$0xf] }
  0x37   : > { %264 = vrot.lane.b32.xlu1 %v2393_v27, %s2936_s17  ;;  %v387_v11 = vor.u32 %v386_v58, %v383_v57  ;;  %v3164_v27 = vrot.slane %v373_v15, 4  ;;  %v227_v38 = vld [vmem:[%s3037_s13 + $0x18] sm:$0xf]  ;;  %v2441_v40 = vld [vmem:[%s3037_s13 + $0x68] sm:$0xf]  ;;  %v398_v42 = vshll.u32 %v3173_v32, 16  ;;  %v640_v32 = vsel %vm3065_vm2, %v3178_v35, %v3168_v29 }
  0x38   : > { %236 = vst.msk [vmem:[#allocation2 + $0x18] sm:$0xf] %vm232_vm3, %v227_v38  ;;  %v2446_v43 = vld [vmem:[%s3037_s13 + $0x8] sm:$0xf]  ;;  %v2447_v44 = vld [vmem:[%s3037_s13 + $0xc] sm:$0x1] }
  0x39   : > { %v3154_v22 = vrot.slane %v387_v11, 4  ;;  %v2394_v45 = vld [vmem:[%s3037_s13 + $0x68] sm:$0xf]  ;;  %v2448_v46 = vld [vmem:[%s3037_s13 + $0x10] sm:$0xf]  ;;  %v836_v49 = vshll.u32 %v2446_v43, 16  ;;  %v379_v3 = vsel %vm3065_vm2, %v3164_v27, %v3158_v24 }
  0x3a   : > { %426 = vrot.lane.b32.xlu0 %v351_v31, %s2938_s7  ;;  %v2433_v31 = vld [vmem:[%s3037_s13 + $0x20] sm:$0xf]  ;;  %v2449_v47 = vld [vmem:[%s3037_s13 + $0x14] sm:$0x1]  ;;  %v842_v50 = vshll.u32 %v2447_v44, 16  ;;  %v850_v52 = vshll.u32 %v2448_v46, 16 }
  0x3b   : > { %428 = vrot.lane.b32.xlu1 %v365_v39, %s2938_s7  ;;  %v226_v39 = vld [vmem:[%s3037_s13 + $0x10] sm:$0xf]  ;;  %v856_v53 = vshll.u32 %v2449_v47, 16  ;;  %v229_v54 = vld [vmem:[%s3037_s13 + $0x28] sm:$0xf]  ;;  %v393_v56 = vsel %vm3065_vm2, %v3154_v22, %v3156_v23  ;;  %v838_v58 = vrot.slane %v836_v49, 5 }
  0x3c   : > { %235 = vst.msk [vmem:[#allocation2 + $0x10] sm:$0xf] %vm232_vm3, %v226_v39  ;;  %v2395_v55 = vld [vmem:[%s3037_s13 + $0x70] sm:$0xf]  ;;  %238 = vst.msk [vmem:[#allocation2 + $0x28] sm:$0xf] %vm232_vm3, %v229_v54 }
  0x3d   : > { %v228_v59 = vld [vmem:[%s3037_s13 + $0x20] sm:$0xf]  ;;  %v2450_v60 = vld [vmem:[%s3037_s13 + $0x18] sm:$0xf]  ;;  %v844_v61 = vrot.slane %v842_v50, 5  ;;  %v852_v63 = vrot.slane %v850_v52, 5 }
  0x3e   : > { %476 = vrot.lane.b32.xlu0 %v2400_v48, %s2935_s16  ;;  %v833_v48 = vshrl.u32 %v2446_v43, 16  ;;  %v858_v0 = vrot.slane %v856_v53, 5  ;;  %237 = vst.msk [vmem:[#allocation2 + $0x20] sm:$0xf] %vm232_vm3, %v228_v59  ;;  %v2452_v5 = vld [vmem:[%s3037_s13 + $0x20] sm:$0xf] }
  0x3f   : > { %478 = vrot.lane.b32.xlu1 %v2401_v51, %s2935_s16  ;;  %v847_v51 = vshrl.u32 %v2448_v46, 16  ;;  %v2453_v6 = vld [vmem:[%s3037_s13 + $0x24] sm:$0x1]  ;;  %v861_v7 = vshrl.u32 %v2450_v60, 16  ;;  %v864_v8 = vshll.u32 %v2450_v60, 16  ;;  %v875_v11 = vshrl.u32 %v2452_v5, 16 }
  0x40   : > { %v835_v57 = vrot.slane %v833_v48, 4  ;;  %v878_v12 = vshll.u32 %v2452_v5, 16  ;;  %v884_v16 = vshll.u32 %v2453_v6, 16  ;;  %v3219_v17 = vrot.slane %v409_v1, 4  ;;  %v2402_v22 = vld [vmem:[%s3037_s13 + $0xb0] sm:$0xf] }
  0x41   : > { %v849_v62 = vrot.slane %v847_v51, 4  ;;  %v863_v14 = vrot.slane %v861_v7, 4  ;;  %v866_v15 = vrot.slane %v864_v8, 5  ;;  %v2456_v33 = vld [vmem:[%s3037_s13 + $0x30] sm:$0xf]  ;;  %v397_v47 = vrot.slane %v395_v41, 4 }
  0x42   : > { %526 = vrot.lane.b32.xlu0 %v2408_v2, %s2937_s26  ;;  %v2451_v2 = vld [vmem:[%s3037_s13 + $0x1c] sm:$0x1]  ;;  %v839_v4 = vor.u32 %v838_v58, %v835_v57  ;;  %v880_v21 = vrot.slane %v878_v12, 5  ;;  %v886_v27 = vrot.slane %v884_v16, 5  ;;  %v2403_v39 = vld [vmem:[%s3037_s13 + $0xb8] sm:$0xf] }
  0x43   : > { %528 = vrot.lane.b32.xlu1 %v2409_v10, %s2937_s26  ;;  %v853_v9 = vor.u32 %v852_v63, %v849_v62  ;;  %v870_v10 = vshll.u32 %v2451_v2, 16  ;;  %v867_v24 = vor.u32 %v866_v15, %v863_v14  ;;  %v903_v44 = vshrl.u32 %v2456_v33, 16  ;;  %v304_v46 = vld [vmem:[%s3037_s13 + $0x34] sm:$0x1]  ;;  %v2410_v51 = vld [vmem:[%s3037_s13 + $0xf8] sm:$0xf] }
  0x44   : > { %v840_v13 = vrot.slane %v839_v4, 4  ;;  %v2457_v52 = vld [vmem:[%s3037_s13 + $0x34] sm:$0x1]  ;;  %v2411_v58 = vld [vmem:[%s3037_s13 + $0x100] sm:$0xf]  ;;  %v400_v60 = vrot.slane %v398_v42, 5  ;;  %v654_v4 = vsel %vm3065_vm2, %v3166_v28, %v3160_v25 }
  0x45   : > { %v868_v43 = vrot.slane %v867_v24, 4  ;;  %v905_v53 = vrot.slane %v903_v44, 4  ;;  %v912_v57 = vshll.u32 %v2457_v52, 16  ;;  %v2434_v5 = vld [vmem:[%s3037_s13 + $0x28] sm:$0xf]  ;;  %vm1303_vm15 = vcmask 519424  }
  0x46   : > { %687 = vrot.lane.b32.xlu0 %v612_v18, %s2939_s12  ;;  %v854_v18 = vrot.slane %v853_v9, 4  ;;  %v845_v23 = vsel %vm3065_vm2, %v840_v13, %v844_v61  ;;  %v231_v6 = vld [vmem:[%s3037_s13 + $0x38] sm:$0xf]  ;;  %v230_v7 = vld [vmem:[%s3037_s13 + $0x30] sm:$0xf]  ;;  %v401_v28 = vor.u32 %v400_v60, %v397_v47  ;;  %vm1368_vm0 = vcmask 781824  }
  0x47   : > { %689 = vrot.lane.b32.xlu1 %v626_v20, %s2939_s12  ;;  %v877_v20 = vrot.slane %v875_v11, 4  ;;  %952 = vst.msk [vmem:[#allocation2 + $0x4] sm:$0xf] %vm232_vm3, %v845_v23  ;;  %v914_v63 = vrot.slane %v912_v57, 5  ;;  %240 = vst.msk [vmem:[#allocation2 + $0x38] sm:$0xf] %vm232_vm3, %v231_v6 }
  0x48   : > { %v859_v1 = vsel %vm3065_vm2, %v854_v18, %v858_v0  ;;  %v404_v0 = vshll.u32 %v304_v46, 16  ;;  %239 = vst.msk [vmem:[#allocation2 + $0x30] sm:$0xf] %vm232_vm3, %v230_v7  ;;  %v2435_v29 = vld [vmem:[%s3037_s13 + $0x30] sm:$0xf]  ;;  %v402_v14 = vrot.slane %v401_v28, 4 }
  0x49   : > { %v881_v34 = vor.u32 %v880_v21, %v877_v20  ;;  %953 = vst.msk [vmem:[#allocation2 + $0xc] sm:$0xf] %vm232_vm3, %v859_v1  ;;  %v306_v35 = vld [vmem:[%s3037_s13 + $0x3c] sm:$0x1]  ;;  %v2442_v8 = vld [vmem:[%s3037_s13 + $0x70] sm:$0xf] }
  0x4a   : > { %737 = vrot.lane.b32.xlu0 %v2432_v26, %s2940_s23  ;;  %v872_v26 = vrot.slane %v870_v10, 5  ;;  %v2426_v25 = vld [vmem:[%s3037_s13 + $0xc0] sm:$0xf]  ;;  %v2443_v9 = vld [vmem:[%s3037_s13 + $0x78] sm:$0xf]  ;;  %v418_v11 = vshll.u32 %v306_v35, 16 }
  0x4b   : > { %739 = vrot.lane.b32.xlu1 %v2433_v31, %s2940_s23  ;;  %v2454_v31 = vld [vmem:[%s3037_s13 + $0x28] sm:$0xf]  ;;  %v882_v48 = vrot.slane %v881_v34, 4  ;;  %v2396_v13 = vld [vmem:[%s3037_s13 + $0x78] sm:$0xf]  ;;  %v406_v15 = vrot.slane %v404_v0, 5 }
  0x4c   : > { %v892_v38 = vshll.u32 %v2454_v31, 16  ;;  %v873_v19 = vsel %vm3065_vm2, %v868_v43, %v872_v26  ;;  %v2428_v12 = vld [vmem:[%s3037_s13 + $0xc8] sm:$0xf]  ;;  %v656_v16 = vshrl.u32 %v2426_v25, 16  ;;  %v659_v18 = vshll.u32 %v2426_v25, 16 }
  0x4d   : > { %954 = vst.msk [vmem:[#allocation2 + $0x14] sm:$0xf] %vm232_vm3, %v873_v19  ;;  %v2397_v20 = vld [vmem:[%s3037_s13 + $0x80] sm:$0xf]  ;;  %v670_v23 = vshrl.u32 %v2428_v12, 16  ;;  %v407_v24 = vsel %vm3065_vm2, %v402_v14, %v406_v15  ;;  %vm1433_vm1 = vcmask 1044224  }
  0x4e   : > { %787 = vrot.lane.b32.xlu0 %v2440_v37, %s2941_s6  ;;  %v889_v37 = vshrl.u32 %v2454_v31, 16  ;;  %v894_v50 = vrot.slane %v892_v38, 5  ;;  %v658_v26 = vrot.slane %v656_v16, 4  ;;  %v2427_v31 = vld [vmem:[%s3037_s13 + $0xc4] sm:$0x1] }
  0x4f   : > { %789 = vrot.lane.b32.xlu1 %v2441_v40, %s2941_s6  ;;  %v3233_v40 = vrot.slane %v412_v36, 5  ;;  %v2455_v36 = vld [vmem:[%s3037_s13 + $0x2c] sm:$0x1]  ;;  %v672_v1 = vrot.slane %v670_v23, 4  ;;  %v2460_v38 = vld [vmem:[%s3037_s13 + $0x40] sm:$0xf] }
  0x50   : > { %v891_v49 = vrot.slane %v889_v37, 4  ;;  %v2458_v37 = vld [vmem:[%s3037_s13 + $0x38] sm:$0xf]  ;;  %v931_v44 = vshrl.u32 %v2460_v38, 16  ;;  %v2404_v46 = vld [vmem:[%s3037_s13 + $0xc0] sm:$0xf] }
  0x51   : > { %v415_v10 = vor.u32 %v3233_v40, %v3219_v17  ;;  %v673_v17 = vshll.u32 %v2428_v12, 16  ;;  %v917_v40 = vshrl.u32 %v2458_v37, 16  ;;  %v920_v43 = vshll.u32 %v2458_v37, 16  ;;  %v2437_v35 = vld [vmem:[%s3037_s13 + $0x40] sm:$0xf] }
  0x52   : > { %266 = vrot.lane.b32.xlu0 %v2394_v45, %s2936_s17  ;;  %v906_v45 = vshll.u32 %v2456_v33, 16  ;;  %v895_v41 = vor.u32 %v894_v50, %v891_v49  ;;  %v2405_v49 = vld [vmem:[%s3037_s13 + $0xc8] sm:$0xf]  ;;  %v933_v19 = vrot.slane %v931_v44, 4 }
  0x53   : > { %268 = vrot.lane.b32.xlu1 %v2395_v55, %s2936_s17  ;;  %v887_v55 = vsel %vm3065_vm2, %v882_v48, %v886_v27  ;;  %v416_v21 = vrot.slane %v415_v10, 4  ;;  %v661_v27 = vrot.slane %v659_v18, 5  ;;  %v675_v34 = vrot.slane %v673_v17, 5  ;;  %v2445_v25 = vld [vmem:[%s3037_s13 + $0x88] sm:$0xf] }
  0x54   : > { %v908_v54 = vrot.slane %v906_v45, 5  ;;  %955 = vst.msk [vmem:[#allocation2 + $0x1c] sm:$0xf] %vm232_vm3, %v887_v55  ;;  %v896_v61 = vrot.slane %v895_v41, 4  ;;  %v934_v45 = vshll.u32 %v2460_v38, 16  ;;  %v665_v48 = vshll.u32 %v2427_v31, 16 }
  0x55   : > { %v662_v47 = vor.u32 %v661_v27, %v658_v26  ;;  %v919_v50 = vrot.slane %v917_v40, 4  ;;  %v676_v52 = vor.u32 %v675_v34, %v672_v1  ;;  %v2461_v55 = vld [vmem:[%s3037_s13 + $0x44] sm:$0x1] }
  0x56   : > { %430 = vrot.lane.b32.xlu0 %v379_v3, %s2938_s7  ;;  %v909_v59 = vor.u32 %v908_v54, %v905_v53  ;;  %v2459_v54 = vld [vmem:[%s3037_s13 + $0x3c] sm:$0x1]  ;;  %v2823_v31 = vld [vmem:[#allocation2 + $0x4] ss:$8 sps:$4 sm:$0xff]  }
  0x57   : > { %432 = vrot.lane.b32.xlu1 %v393_v56, %s2938_s7  ;;  %v898_v56 = vshll.u32 %v2455_v36, 16  ;;  %v936_v36 = vrot.slane %v934_v45, 5  ;;  %v663_v60 = vrot.slane %v662_v47, 4  ;;  %2480 = vmatprep.mubr.msk.bf16.mxu0 %vm1081_vm11, %v2823_v31 }
  0x58   : > { %v910_v2 = vrot.slane %v909_v59, 4  ;;  %v2412_v59 = vld [vmem:[%s3037_s13 + $0x108] sm:$0xf] }
  0x59   : > { %v900_v62 = vrot.slane %v898_v56, 5  ;;  %v926_v56 = vshll.u32 %v2459_v54, 16  ;;  %v937_v57 = vor.u32 %v936_v36, %v933_v19 }
  0x5a   : > { %480 = vrot.lane.b32.xlu0 %v2402_v22, %s2935_s16  ;;  %v915_v42 = vsel %vm3065_vm2, %v910_v2, %v914_v63  ;;  %v420_v22 = vrot.slane %v418_v11, 5 }
  0x5b   : > { %482 = vrot.lane.b32.xlu1 %v2403_v39, %s2935_s16  ;;  %v901_v3 = vsel %vm3065_vm2, %v896_v61, %v900_v62  ;;  %957 = vst.msk [vmem:[#allocation2 + $0x2c] sm:$0xf] %vm232_vm3, %v915_v42  ;;  %v2429_v39 = vld [vmem:[%s3037_s13 + $0xcc] sm:$0x1]  ;;  %v667_v61 = vrot.slane %v665_v48, 5  ;;  %v928_v63 = vrot.slane %v926_v56, 5 }
  0x5c   : > { %956 = vst.msk [vmem:[#allocation2 + $0x24] sm:$0xf] %vm232_vm3, %v901_v3  ;;  %v421_v33 = vsel %vm3065_vm2, %v416_v21, %v420_v22  ;;  %v679_v53 = vshll.u32 %v2429_v39, 16  ;;  %v938_v0 = vrot.slane %v937_v57, 4  ;;  %v2413_v3 = vld [vmem:[%s3037_s13 + $0x110] sm:$0xf] }
  0x5d   : > { %v668_v6 = vsel %vm3065_vm2, %v663_v60, %v667_v61  ;;  %v2824_v19 = vld [vmem:[#allocation2 + $0x14] ss:$8 sps:$4 sm:$0xff]  }
  0x5e   : > { %530 = vrot.lane.b32.xlu0 %v2410_v51, %s2937_s26  ;;  %v922_v51 = vrot.slane %v920_v43, 5  ;;  %v681_v42 = vrot.slane %v679_v53, 5 }
  0x5f   : > { %532 = vrot.lane.b32.xlu1 %v2411_v58, %s2937_s26  ;;  %v940_v58 = vshll.u32 %v2461_v55, 16 }
  0x60   : > { %v923_v41 = vor.u32 %v922_v51, %v919_v50 }
  0x61   : > { %v942_v2 = vrot.slane %v940_v58, 5 }
  0x62   : > { %691 = vrot.lane.b32.xlu0 %v640_v32, %s2939_s12  ;;  %v924_v62 = vrot.slane %v923_v41, 4  ;;  %v677_v32 = vrot.slane %v676_v52, 4 }
  0x63   : > { %693 = vrot.lane.b32.xlu1 %v654_v4, %s2939_s12 }
  0x64   : > { %v929_v4 = vsel %vm3065_vm2, %v924_v62, %v928_v63  ;;  %v682_v7 = vsel %vm3065_vm2, %v677_v32, %v681_v42  ;;  %v2826_v32 = vld [vmem:[#allocation2 + $0x24] ss:$8 sps:$4 sm:$0xff]  }
  0x65   : > { %958 = vst.msk [vmem:[#allocation2 + $0x34] sm:$0xf] %vm232_vm3, %v929_v4 }
  0x66   : > { %741 = vrot.lane.b32.xlu0 %v2434_v5, %s2940_s23  ;;  %v943_v5 = vsel %vm3065_vm2, %v938_v0, %v942_v2 }
  0x67   : > { %743 = vrot.lane.b32.xlu1 %v2435_v29, %s2940_s23  ;;  %959 = vst.msk [vmem:[#allocation2 + $0x3c] sm:$0xf] %vm232_vm3, %v943_v5  ;;  %v2436_v29 = vld [vmem:[%s3037_s13 + $0x38] sm:$0xf] }
  0x6a   : > { %791 = vrot.lane.b32.xlu0 %v2442_v8, %s2941_s6  ;;  %v2444_v8 = vld [vmem:[%s3037_s13 + $0x80] sm:$0xf] }
  0x6b   : > { %793 = vrot.lane.b32.xlu1 %v2443_v9, %s2941_s6 }
  0x6e   : > { %270 = vrot.lane.b32.xlu0 %v2396_v13, %s2936_s17 }
  0x6f   : > { %272 = vrot.lane.b32.xlu1 %v2397_v20, %s2936_s17 }
  0x72   : > { %434 = vrot.lane.b32.xlu0 %v407_v24, %s2938_s7 }
  0x73   : > { %436 = vrot.lane.b32.xlu1 %v421_v33, %s2938_s7 }
  0x76   : > { %484 = vrot.lane.b32.xlu0 %v2404_v46, %s2935_s16 }
  0x77   : > { %486 = vrot.lane.b32.xlu1 %v2405_v49, %s2935_s16 }
  0x7a   : > { %534 = vrot.lane.b32.xlu0 %v2412_v59, %s2937_s26 }
  0x7b   : > { %536 = vrot.lane.b32.xlu1 %v2413_v3, %s2937_s26 }
  0x7e   : > { %695 = vrot.lane.b32.xlu0 %v668_v6, %s2939_s12 }
  0x7f   : > { %697 = vrot.lane.b32.xlu1 %v682_v7, %s2939_s12  ;;  %s2876_s12 = sshll.u32 %s2943_s11, 4  ;;  %s2877_s12 = int_to_ptr.vmem [resolvable:$false] %s2876_s12 }
  0x80   : > { %s2878_s14 = scalar_lea.vmem %s2877_s12, 2048 }
  0x82   : > { %745 = vrot.lane.b32.xlu0 %v2436_v29, %s2940_s23  ;;  %v2942_v29 = vmov 0.0  }
  0x83   : > { %747 = vrot.lane.b32.xlu1 %v2437_v35, %s2940_s23  ;;  %1171 = vst.msk [vmem:[#allocation4 + $0x10] sm:$0xff] %vm1167_vm12, %v2942_v29  ;;  %1168 = vst.msk [vmem:[#allocation4] sm:$0xff] %vm1167_vm12, %v2942_v29 }
  0x84   : > { %1172 = vst.msk [vmem:[#allocation4 + $0x18] sm:$0x3] %vm1169_vm13, %v2942_v29  ;;  %1170 = vst.msk [vmem:[#allocation4 + $0x8] sm:$0x3] %vm1169_vm13, %v2942_v29 }
  0x85   : > { %1173 = vst.msk [vmem:[#allocation4 + $0x20] sm:$0xff] %vm1167_vm12, %v2942_v29  ;;  %1175 = vst.msk [vmem:[#allocation4 + $0x30] sm:$0xff] %vm1167_vm12, %v2942_v29 }
  0x86   : > { %795 = vrot.lane.b32.xlu0 %v2444_v8, %s2941_s6  ;;  %1174 = vst.msk [vmem:[#allocation4 + $0x28] sm:$0x3] %vm1169_vm13, %v2942_v29  ;;  %1176 = vst.msk [vmem:[#allocation4 + $0x38] sm:$0x3] %vm1169_vm13, %v2942_v29 }
  0x87   : > { %797 = vrot.lane.b32.xlu1 %v2445_v25, %s2941_s6  ;;  %1177 = vst.msk [vmem:[#allocation4 + $0x40] sm:$0xff] %vm1167_vm12, %v2942_v29  ;;  %1179 = vst.msk [vmem:[#allocation4 + $0x50] sm:$0xff] %vm1167_vm12, %v2942_v29 }
  0x88   : > { %1178 = vst.msk [vmem:[#allocation4 + $0x48] sm:$0x3] %vm1169_vm13, %v2942_v29  ;;  %1180 = vst.msk [vmem:[#allocation4 + $0x58] sm:$0x3] %vm1169_vm13, %v2942_v29 }
  0x89   : > { %1181 = vst.msk [vmem:[#allocation4 + $0x60] sm:$0xff] %vm1167_vm12, %v2942_v29  ;;  %1183 = vst.msk [vmem:[#allocation4 + $0x70] sm:$0xff] %vm1167_vm12, %v2942_v29 }
  0x8a   : > { %1182 = vst.msk [vmem:[#allocation4 + $0x68] sm:$0x3] %vm1169_vm13, %v2942_v29  ;;  %1184 = vst.msk [vmem:[#allocation4 + $0x78] sm:$0x3] %vm1169_vm13, %v2942_v29 }
  0x8b   : > { %v475_v28 = vpop.permute.xlu1 %474  ;;  %1185 = vst.msk [vmem:[#allocation4 + $0x80] sm:$0xff] %vm1167_vm12, %v2942_v29  ;;  %1187 = vst.msk [vmem:[#allocation4 + $0x90] sm:$0xff] %vm1167_vm12, %v2942_v29 }
  0x8c   : > { %v259_v30 = vpop.permute.xlu0 %258  ;;  %1186 = vst.msk [vmem:[#allocation4 + $0x88] sm:$0x3] %vm1169_vm13, %v2942_v29  ;;  %1188 = vst.msk [vmem:[#allocation4 + $0x98] sm:$0x3] %vm1169_vm13, %v2942_v29  ;;  %v2845_v29 = vld [vmem:[%s3777_s2 + $0x40] sm:$0xff]  }
  0x8d   : > { %283 = vst.msk [vmem:[#allocation2] sm:$0xf] %vm282_vm4, %v259_v30 }
  0x8f   : > { %v525_v9 = vpop.permute.xlu1 %524 }
  0x90   : > { %v261_v10 = vpop.permute.xlu0 %260 }
  0x91   : > { %284 = vst.msk [vmem:[#allocation2 + $0x8] sm:$0xf] %vm282_vm4, %v261_v10 }
  0x94   : > { %v473_v11 = vpop.permute.xlu0 %472 }
  0x95   : > { %v423_v12 = vpop.permute.xlu1 %422 }
  0x96   : > { %447 = vst.msk [vmem:[#allocation2] sm:$0xf] %vm446_vm5, %v423_v12  ;;  %v1312_v12 = vld [vmem:[#allocation4 + $0x2] sm:$0xff] }
  0x97   : > { %497 = vst.msk [vmem:[#allocation2] sm:$0xf] %vm496_vm6, %v473_v11  ;;  %v1562_v11 = vld [vmem:[#allocation4 + $0x90] sm:$0xff] }
  0x98   : > { %v523_v13 = vpop.permute.xlu0 %522 }
  0x99   : > { %547 = vst.msk [vmem:[#allocation2] sm:$0xf] %vm546_vm7, %v523_v13  ;;  %v425_v14 = vpop.permute.xlu1 %424 }
  0x9a   : > { %448 = vst.msk [vmem:[#allocation2 + $0x8] sm:$0xf] %vm446_vm5, %v425_v14  ;;  %v2670_v14 = vpack.c.bf16 %v1562_v11, %v1562_v11 }
  0x9b   : > { %498 = vst.msk [vmem:[#allocation2 + $0x8] sm:$0xf] %vm496_vm6, %v475_v28  ;;  %v1247_v28 = vld [vmem:[#allocation4 + $0x1] sm:$0xff] }
  0x9c   : > { %v684_v15 = vpop.permute.xlu0 %683  ;;  %548 = vst.msk [vmem:[#allocation2 + $0x8] sm:$0xf] %vm546_vm7, %v525_v9  ;;  %v2623_v9 = vpack.c.bf16 %v1247_v28, %v1247_v28  ;;  %1601 = vrot.lane.b32.xlu1 %v2670_v14, %s2937_s26 }
  0x9d   : > { %708 = vst.msk [vmem:[#allocation2] sm:$0xf] %vm707_vm8, %v684_v15  ;;  %v686_v16 = vpop.permute.xlu1 %685  ;;  %v2631_v15 = vpack.c.bf16 %v1312_v12, %v1312_v12 }
  0x9e   : > { %709 = vst.msk [vmem:[#allocation2 + $0x8] sm:$0xf] %vm707_vm8, %v686_v16  ;;  %1279 = vrot.lane.b32.xlu0 %v2623_v9, %s2938_s7  ;;  %v2828_v16 = vld [vmem:[#allocation2 + $0x34] ss:$8 sps:$4 sm:$0xff]  }
  0xa0   : > { %v734_v18 = vpop.permute.xlu0 %733 }
  0xa1   : > { %758 = vst.msk [vmem:[#allocation2] sm:$0xf] %vm757_vm9, %v734_v18  ;;  %v736_v20 = vpop.permute.xlu1 %735 }
  0xa2   : > { %759 = vst.msk [vmem:[#allocation2 + $0x8] sm:$0xf] %vm757_vm9, %v736_v20  ;;  %1344 = vrot.lane.b32.xlu0 %v2631_v15, %s2937_s26  ;;  %v1690_v20 = vld [vmem:[#allocation4 + $0x92] sm:$0xff] }
  0xa4   : > { %v784_v21 = vpop.permute.xlu0 %783 }
  0xa5   : > { %808 = vst.msk [vmem:[#allocation2] sm:$0xf] %vm807_vm10, %v784_v21  ;;  %v786_v22 = vpop.permute.xlu1 %785  ;;  %v2686_v21 = vpack.c.bf16 %v1690_v20, %v1690_v20 }
  0xa6   : > { %809 = vst.msk [vmem:[#allocation2 + $0x8] sm:$0xf] %vm807_vm10, %v786_v22  ;;  %v1198_v22 = vld [vmem:[#allocation4] sm:$0xff] }
  0xa7   : > { %1730 = vst.msk [vmem:[#allocation3 + $0x5c] sm:$0xf] %vm1238_vm14, %v2686_v21 }
  0xa8   : > { %v263_v23 = vpop.permute.xlu0 %262 }
  0xa9   : > { %285 = vst.msk [vmem:[#allocation2 + $0x10] sm:$0xf] %vm282_vm4, %v263_v23  ;;  %v265_v17 = vpop.permute.xlu1 %264  ;;  %v2615_v23 = vpack.c.bf16 %v1198_v22, %v1198_v22 }
  0xaa   : > { %286 = vst.msk [vmem:[#allocation2 + $0x18] sm:$0xf] %vm282_vm4, %v265_v17 }
  0xab   : > { %1239 = vst.msk [vmem:[#allocation3] sm:$0xf] %vm1238_vm14, %v2615_v23 }
  0xac   : > { %v427_v24 = vpop.permute.xlu0 %426 }
  0xad   : > { %449 = vst.msk [vmem:[#allocation2 + $0x10] sm:$0xf] %vm446_vm5, %v427_v24  ;;  %v429_v26 = vpop.permute.xlu1 %428  ;;  %v2821_v27 = vld [vmem:[#allocation2] ss:$8 sps:$4 sm:$0xff]  }
  0xae   : > { %450 = vst.msk [vmem:[#allocation2 + $0x18] sm:$0xf] %vm446_vm5, %v429_v26  ;;  %1127 = vmatmul.mubr.bf16.vlgmr.msra.gmra.mxu0 %v2821_v27  ;;  %v3422_v26 = vld [vmem:[%s3779_s4] ss:$0 sm:$0xff] }
  0xaf   : > { %2481 = vmatprep.mubr.msk.bf16.mxu0 %vm1081_vm11, %v2824_v19 }
  0xb0   : > { %v477_v33 = vpop.permute.xlu0 %476 }
  0xb1   : > { %499 = vst.msk [vmem:[#allocation2 + $0x10] sm:$0xf] %vm496_vm6, %v477_v33  ;;  %v479_v1 = vpop.permute.xlu1 %478 }
  0xb2   : > { %500 = vst.msk [vmem:[#allocation2 + $0x18] sm:$0xf] %vm496_vm6, %v479_v1 }
  0xb4   : > { %v527_v34 = vpop.permute.xlu0 %526 }
  0xb5   : > { %549 = vst.msk [vmem:[#allocation2 + $0x10] sm:$0xf] %vm546_vm7, %v527_v34  ;;  %v529_v37 = vpop.permute.xlu1 %528 }
  0xb6   : > { %550 = vst.msk [vmem:[#allocation2 + $0x18] sm:$0xf] %vm546_vm7, %v529_v37 }
  0xb8   : > { %v688_v38 = vpop.permute.xlu0 %687 }
  0xb9   : > { %710 = vst.msk [vmem:[#allocation2 + $0x10] sm:$0xf] %vm707_vm8, %v688_v38  ;;  %v690_v39 = vpop.permute.xlu1 %689 }
  0xba   : > { %711 = vst.msk [vmem:[#allocation2 + $0x18] sm:$0xf] %vm707_vm8, %v690_v39 }
  0xbc   : > { %v738_v40 = vpop.permute.xlu0 %737 }
  0xbd   : > { %760 = vst.msk [vmem:[#allocation2 + $0x10] sm:$0xf] %vm757_vm9, %v738_v40  ;;  %v740_v43 = vpop.permute.xlu1 %739  ;;  %v2831_v40 = vld [vmem:[%s3777_s2 + $0x78] sm:$0xff]  }
  0xbe   : > { %761 = vst.msk [vmem:[#allocation2 + $0x18] sm:$0xf] %vm757_vm9, %v740_v43  ;;  %v2832_v43 = vld [vmem:[%s3777_s2 + $0x38] sm:$0xff]   ;;  %2688 = vmatprep.subr.bf16.mxu1 %v2831_v40 }
  0xbf   : > { %2689 = vmatpush3.bf16.msra.mxu1 %v2832_v43 }
  0xc0   : > { %v788_v44 = vpop.permute.xlu0 %787 }
  0xc1   : > { %810 = vst.msk [vmem:[#allocation2 + $0x10] sm:$0xf] %vm807_vm10, %v788_v44  ;;  %v790_v45 = vpop.permute.xlu1 %789 }
  0xc2   : > { %811 = vst.msk [vmem:[#allocation2 + $0x18] sm:$0xf] %vm807_vm10, %v790_v45 }
  0xc4   : > { %v267_v46 = vpop.permute.xlu0 %266 }
  0xc5   : > { %287 = vst.msk [vmem:[#allocation2 + $0x20] sm:$0xf] %vm282_vm4, %v267_v46  ;;  %v269_v47 = vpop.permute.xlu1 %268 }
  0xc6   : > { %288 = vst.msk [vmem:[#allocation2 + $0x28] sm:$0xf] %vm282_vm4, %v269_v47 }
  0xc8   : > { %v431_v48 = vpop.permute.xlu0 %430  ;;  %v962_v49 = vld [vmem:[#allocation2 + $0x10] sm:$0xff] }
  0xc9   : > { %451 = vst.msk [vmem:[#allocation2 + $0x20] sm:$0xf] %vm446_vm5, %v431_v48  ;;  %v433_v50 = vpop.permute.xlu1 %432  ;;  %v963_v51 = vld [vmem:[#allocation2 + $0x18] sm:$0xff] }
  0xca   : > { %452 = vst.msk [vmem:[#allocation2 + $0x28] sm:$0xf] %vm446_vm5, %v433_v50  ;;  %v2465_v36 = vcombine.low %v962_v49, %v963_v51  ;;  %v2833_v50 = vld [vmem:[%s3777_s2 + $0x70] sm:$0xff]  }
  0xcb   : > { %v2834_v51 = vld [vmem:[%s3777_s2 + $0x30] sm:$0xff]   ;;  %2690 = vmatprep.subr.bf16.mxu1 %v2833_v50 }
  0xcc   : > { %v481_v52 = vpop.permute.xlu0 %480  ;;  %1135 = vmatmul.mubr.bf16.gmra.mxu0 %v2465_v36  ;;  %2691 = vmatpush3.bf16.msra.mxu1 %v2834_v51 }
  0xcd   : > { %501 = vst.msk [vmem:[#allocation2 + $0x20] sm:$0xf] %vm496_vm6, %v481_v52  ;;  %v483_v53 = vpop.permute.xlu1 %482  ;;  %2482 = vmatprep.mubr.msk.bf16.mxu0 %vm1081_vm11, %v2826_v32 }
  0xce   : > { %502 = vst.msk [vmem:[#allocation2 + $0x28] sm:$0xf] %vm496_vm6, %v483_v53 }
  0xd0   : > { %v531_v54 = vpop.permute.xlu0 %530 }
  0xd1   : > { %551 = vst.msk [vmem:[#allocation2 + $0x20] sm:$0xf] %vm546_vm7, %v531_v54  ;;  %v533_v55 = vpop.permute.xlu1 %532 }
  0xd2   : > { %552 = vst.msk [vmem:[#allocation2 + $0x28] sm:$0xf] %vm546_vm7, %v533_v55 }
  0xd4   : > { %v692_v41 = vpop.permute.xlu0 %691 }
  0xd5   : > { %712 = vst.msk [vmem:[#allocation2 + $0x20] sm:$0xf] %vm707_vm8, %v692_v41  ;;  %v694_v56 = vpop.permute.xlu1 %693  ;;  %v2835_v41 = vld [vmem:[%s3777_s2 + $0x68] sm:$0xff]  }
  0xd6   : > { %713 = vst.msk [vmem:[#allocation2 + $0x28] sm:$0xf] %vm707_vm8, %v694_v56  ;;  %v2836_v56 = vld [vmem:[%s3777_s2 + $0x28] sm:$0xff]   ;;  %2692 = vmatprep.subr.bf16.mxu1 %v2835_v41 }
  0xd7   : > { %2693 = vmatpush3.bf16.msra.mxu1 %v2836_v56 }
  0xd8   : > { %v742_v57 = vpop.permute.xlu0 %741 }
  0xd9   : > { %762 = vst.msk [vmem:[#allocation2 + $0x20] sm:$0xf] %vm757_vm9, %v742_v57  ;;  %v744_v58 = vpop.permute.xlu1 %743  ;;  %v2837_v57 = vld [vmem:[%s3777_s2 + $0x60] sm:$0xff]  }
  0xda   : > { %763 = vst.msk [vmem:[#allocation2 + $0x28] sm:$0xf] %vm757_vm9, %v744_v58  ;;  %v2838_v58 = vld [vmem:[%s3777_s2 + $0x20] sm:$0xff]   ;;  %2694 = vmatprep.subr.bf16.mxu1 %v2837_v57 }
  0xdb   : > { %2695 = vmatpush3.bf16.msra.mxu1 %v2838_v58 }
  0xdc   : > { %v792_v59 = vpop.permute.xlu0 %791 }
  0xdd   : > { %812 = vst.msk [vmem:[#allocation2 + $0x20] sm:$0xf] %vm807_vm10, %v792_v59  ;;  %v794_v60 = vpop.permute.xlu1 %793  ;;  %v2839_v59 = vld [vmem:[%s3777_s2 + $0x58] sm:$0xff]  }
  0xde   : > { %813 = vst.msk [vmem:[#allocation2 + $0x28] sm:$0xf] %vm807_vm10, %v794_v60  ;;  %2696 = vmatprep.subr.bf16.mxu1 %v2839_v59  ;;  %v2840_v60 = vld [vmem:[%s3777_s2 + $0x18] sm:$0xff]  }
  0xdf   : > { %2697 = vmatpush3.bf16.msra.mxu1 %v2840_v60 }
  0xe0   : > { %v271_v61 = vpop.permute.xlu0 %270 }
  0xe1   : > { %289 = vst.msk [vmem:[#allocation2 + $0x30] sm:$0xf] %vm282_vm4, %v271_v61  ;;  %v273_v62 = vpop.permute.xlu1 %272 }
  0xe2   : > { %290 = vst.msk [vmem:[#allocation2 + $0x38] sm:$0xf] %vm282_vm4, %v273_v62 }
  0xe4   : > { %v435_v63 = vpop.permute.xlu0 %434  ;;  %v964_v0 = vld [vmem:[#allocation2 + $0x20] sm:$0xff] }
  0xe5   : > { %453 = vst.msk [vmem:[#allocation2 + $0x30] sm:$0xf] %vm446_vm5, %v435_v63  ;;  %v437_v2 = vpop.permute.xlu1 %436  ;;  %v965_v3 = vld [vmem:[#allocation2 + $0x28] sm:$0xff] }
  0xe6   : > { %454 = vst.msk [vmem:[#allocation2 + $0x38] sm:$0xf] %vm446_vm5, %v437_v2  ;;  %v2467_v42 = vcombine.low %v964_v0, %v965_v3  ;;  %v2841_v0 = vld [vmem:[%s3777_s2 + $0x50] sm:$0xff]  }
  0xe7   : > { %v2842_v3 = vld [vmem:[%s3777_s2 + $0x10] sm:$0xff]   ;;  %2698 = vmatprep.subr.bf16.mxu1 %v2841_v0 }
  0xe8   : > { %v485_v4 = vpop.permute.xlu0 %484  ;;  %1143 = vmatmul.mubr.bf16.gmra.mxu0 %v2467_v42  ;;  %2699 = vmatpush3.bf16.msra.mxu1 %v2842_v3  ;;  %v1626_v0 = vld [vmem:[#allocation4 + $0x91] sm:$0xff] }
  0xe9   : > { %503 = vst.msk [vmem:[#allocation2 + $0x30] sm:$0xf] %vm496_vm6, %v485_v4  ;;  %v487_v5 = vpop.permute.xlu1 %486  ;;  %2483 = vmatprep.mubr.msk.bf16.mxu0 %vm1081_vm11, %v2828_v16 }
  0xea   : > { %504 = vst.msk [vmem:[#allocation2 + $0x38] sm:$0xf] %vm496_vm6, %v487_v5  ;;  %v2843_v5 = vld [vmem:[%s3777_s2 + $0x48] sm:$0xff]  }
  0xeb   : > { %2700 = vmatprep.subr.bf16.mxu1 %v2843_v5 }
  0xec   : > { %v535_v6 = vpop.permute.xlu0 %534 }
  0xed   : > { %553 = vst.msk [vmem:[#allocation2 + $0x30] sm:$0xf] %vm546_vm7, %v535_v6  ;;  %v537_v7 = vpop.permute.xlu1 %536 }
  0xee   : > { %554 = vst.msk [vmem:[#allocation2 + $0x38] sm:$0xf] %vm546_vm7, %v537_v7  ;;  %v2844_v7 = vld [vmem:[%s3777_s2 + $0x8] sm:$0xff]  }
  0xef   : > { %2701 = vmatpush3.bf16.msra.mxu1 %v2844_v7 }
  0xf0   : > { %v696_v35 = vpop.permute.xlu0 %695  ;;  %2702 = vmatprep.subr.bf16.mxu1 %v2845_v29 }
  0xf1   : > { %714 = vst.msk [vmem:[#allocation2 + $0x30] sm:$0xf] %vm707_vm8, %v696_v35  ;;  %v698_v8 = vpop.permute.xlu1 %697  ;;  %v2846_v35 = vld [vmem:[%s3777_s2] sm:$0xff]  }
  0xf2   : > { %715 = vst.msk [vmem:[#allocation2 + $0x38] sm:$0xf] %vm707_vm8, %v698_v8 }
  0xf3   : > { %2703 = vmatpush3.bf16.msra.mxu1 %v2846_v35 }
  0xf4   : > { %v746_v25 = vpop.permute.xlu0 %745 }
  0xf5   : > { %764 = vst.msk [vmem:[#allocation2 + $0x30] sm:$0xf] %vm757_vm9, %v746_v25  ;;  %v748_v30 = vpop.permute.xlu1 %747 }
  0xf6   : > { %765 = vst.msk [vmem:[#allocation2 + $0x38] sm:$0xf] %vm757_vm9, %v748_v30 }
  0xf8   : > { %v796_v10 = vpop.permute.xlu0 %795 }
  0xf9   : > { %814 = vst.msk [vmem:[#allocation2 + $0x30] sm:$0xf] %vm807_vm10, %v796_v10  ;;  %v798_v13 = vpop.permute.xlu1 %797 }
  0xfa   : > { %815 = vst.msk [vmem:[#allocation2 + $0x38] sm:$0xf] %vm807_vm10, %v798_v13 }
 0x101   : > { %v2830_v18 = vld [vmem:[#allocation2 + $0x30] ss:$8 sps:$4 sm:$0xff]  }
 0x102   : > { %1151 = vmatmul.mubr.bf16.gmra.mxu0 %v2830_v18 }
 0x10e   : > { %v3562_v3 = vpop.permute.xlu1 %1601 }
 0x110   : > { %v1280_v17 = vpop.permute.xlu0 %1279 }
 0x111   : > { %1304 = vst.msk [vmem:[#allocation3] sm:$0xf] %vm1303_vm15, %v1280_v17 }
 0x114   : > { %v1345_v24 = vpop.permute.xlu0 %1344 }
 0x115   : > { %1369 = vst.msk [vmem:[#allocation3] sm:$0xf] %vm1368_vm0, %v1345_v24 }
 0x16e   : > { %v1128_v27 = vpop.f32.mrf.mxu0 }
 0x16f   : > { %v1129_v31 = vadd.f32 %v3422_v26, %v1128_v27 }
 0x170   : > { %v1130_v33 = vpop.f32.mrf.mxu0 }
 0x171   : > { %v1159_v1 = vmax.f32 %v1129_v31, 0.0 }
 0x172   : > { %v1131_v34 = vpop.f32.mrf.mxu0 }
 0x173   : > { %1190 = vst.msk [vmem:[#allocation4 + $0x11] sm:$0xff] %vm1167_vm12, %v1159_v1  ;;  %v1132_v37 = vadd.f32 %v3422_v26, %v1131_v34 }
 0x174   : > { %v1133_v38 = vpop.f32.mrf.mxu0 }
 0x175   : > { %v1160_v39 = vmax.f32 %v1132_v37, 0.0 }
 0x177   : > { %1191 = vst.msk [vmem:[#allocation4 + $0x21] sm:$0xff] %vm1167_vm12, %v1160_v39 }
 0x17a   : > { %v1490_v44 = vld [vmem:[#allocation4 + $0x12] sm:$0xff] }
 0x17b   : > { %v1248_v45 = vld [vmem:[#allocation4 + $0x11] sm:$0xff]  ;;  %v2655_v47 = vpack.c.bf16 %v1490_v44, %v1490_v44 }
 0x17c   : > { %v1377_v46 = vld [vmem:[#allocation4 + $0x10] sm:$0xff]  ;;  %v2624_v48 = vpack.c.bf16 %v1248_v45, %v1248_v45 }
 0x17d   : > { %v2639_v49 = vpack.c.bf16 %v1377_v46, %v1377_v46  ;;  %1522 = vrot.lane.b32.xlu0 %v2655_v47, %s2938_s7 }
 0x17e   : > { %1281 = vrot.lane.b32.xlu1 %v2624_v48, %s2938_s7  ;;  %1482 = vst.msk [vmem:[#allocation3 + $0x4] sm:$0xf] %vm1238_vm14, %v2624_v48  ;;  %v1683_v19 = vld [vmem:[#allocation4 + $0x22] sm:$0xff] }
 0x17f   : > { %1240 = vst.msk [vmem:[#allocation3 + $0xc] sm:$0xf] %vm1238_vm14, %v2639_v49  ;;  %v1555_v36 = vld [vmem:[#allocation4 + $0x20] sm:$0xff]  ;;  %v2679_v53 = vpack.c.bf16 %v1683_v19, %v1683_v19 }
 0x180   : > { %v1619_v52 = vld [vmem:[#allocation4 + $0x21] sm:$0xff]  ;;  %v2663_v54 = vpack.c.bf16 %v1555_v36, %v1555_v36 }
 0x181   : > { %v2671_v55 = vpack.c.bf16 %v1619_v52, %v1619_v52  ;;  %1409 = vrot.lane.b32.xlu0 %v2639_v49, %s2940_s23  ;;  %1723 = vst.msk [vmem:[#allocation3 + $0x8] sm:$0xf] %vm1238_vm14, %v2679_v53 }
 0x182   : > { %1346 = vrot.lane.b32.xlu1 %v2655_v47, %s2937_s26  ;;  %1241 = vst.msk [vmem:[#allocation3 + $0x18] sm:$0xf] %vm1238_vm14, %v2663_v54 }
 0x183   : > { %1483 = vst.msk [vmem:[#allocation3 + $0x10] sm:$0xf] %vm1238_vm14, %v2671_v55 }
 0x185   : > { %1587 = vrot.lane.b32.xlu0 %v2663_v54, %s2937_s26 }
 0x186   : > { %1524 = vrot.lane.b32.xlu1 %v2679_v53, %s2938_s7 }
 0x189   : > { %1651 = vrot.lane.b32.xlu0 %v2671_v55, %s2940_s23 }
 0x18a   : > { %1411 = vrot.lane.b32.xlu1 %v2663_v54, %s2940_s23 }
 0x18c   : > { %v1136_v61 = vpop.f32.mrf.mxu0 }
 0x18d   : > { %v1137_v62 = vadd.f32 %v3422_v26, %v1136_v61  ;;  %1283 = vrot.lane.b32.xlu0 %v2671_v55, %s2938_s7 }
 0x18e   : > { %v1138_v63 = vpop.f32.mrf.mxu0 }
 0x18f   : > { %v1161_v2 = vmax.f32 %v1137_v62, 0.0 }
 0x190   : > { %v1139_v32 = vpop.f32.mrf.mxu0 }
 0x191   : > { %1192 = vst.msk [vmem:[#allocation4 + $0x31] sm:$0xff] %vm1167_vm12, %v1161_v2  ;;  %v1140_v42 = vadd.f32 %v3422_v26, %v1139_v32  ;;  %1348 = vrot.lane.b32.xlu0 %v2679_v53, %s2937_s26  ;;  %v3543_v53 = vld [vmem:[%s3777_s2 + $0x88] sm:$0xff]   ;;  %v2678_v2 = vpack.c.bf16 %v1626_v0, %v1626_v0 }
 0x192   : > { %v1141_v4 = vpop.f32.mrf.mxu0  ;;  %2739 = vmatprep.subr.bf16.mxu1 %v3543_v53 }
 0x193   : > { %v1162_v6 = vmax.f32 %v1140_v42, 0.0 }
 0x195   : > { %1193 = vst.msk [vmem:[#allocation4 + $0x41] sm:$0xff] %vm1167_vm12, %v1162_v6 }
 0x198   : > { %v1684_v8 = vld [vmem:[#allocation4 + $0x32] sm:$0xff] }
 0x199   : > { %v1556_v25 = vld [vmem:[#allocation4 + $0x30] sm:$0xff]  ;;  %v2680_v30 = vpack.c.bf16 %v1684_v8, %v1684_v8 }
 0x19a   : > { %v1620_v28 = vld [vmem:[#allocation4 + $0x31] sm:$0xff]  ;;  %v2664_v9 = vpack.c.bf16 %v1556_v25, %v1556_v25 }
 0x19b   : > { %v2672_v10 = vpack.c.bf16 %v1620_v28, %v1620_v28  ;;  %1724 = vst.msk [vmem:[#allocation3 + $0x14] sm:$0xf] %vm1238_vm14, %v2680_v30  ;;  %1526 = vrot.lane.b32.xlu0 %v2680_v30, %s2938_s7 }
 0x19c   : > { %1589 = vrot.lane.b32.xlu1 %v2664_v9, %s2937_s26  ;;  %1242 = vst.msk [vmem:[#allocation3 + $0x24] sm:$0xf] %vm1238_vm14, %v2664_v9  ;;  %v1685_v11 = vld [vmem:[#allocation4 + $0x42] sm:$0xff] }
 0x19d   : > { %1484 = vst.msk [vmem:[#allocation3 + $0x1c] sm:$0xf] %vm1238_vm14, %v2672_v10  ;;  %v1557_v12 = vld [vmem:[#allocation4 + $0x40] sm:$0xff]  ;;  %v2681_v14 = vpack.c.bf16 %v1685_v11, %v1685_v11 }
 0x19e   : > { %v1621_v13 = vld [vmem:[#allocation4 + $0x41] sm:$0xff]  ;;  %v2665_v15 = vpack.c.bf16 %v1557_v12, %v1557_v12 }
 0x19f   : > { %v2673_v16 = vpack.c.bf16 %v1621_v13, %v1621_v13  ;;  %1725 = vst.msk [vmem:[#allocation3 + $0x20] sm:$0xf] %vm1238_vm14, %v2681_v14  ;;  %1413 = vrot.lane.b32.xlu0 %v2664_v9, %s2940_s23 }
 0x1a0   : > { %1653 = vrot.lane.b32.xlu1 %v2672_v10, %s2940_s23  ;;  %1243 = vst.msk [vmem:[#allocation3 + $0x30] sm:$0xf] %vm1238_vm14, %v2665_v15 }
 0x1a1   : > { %1485 = vst.msk [vmem:[#allocation3 + $0x28] sm:$0xf] %vm1238_vm14, %v2673_v16 }
 0x1a3   : > { %1591 = vrot.lane.b32.xlu0 %v2665_v15, %s2937_s26 }
 0x1a4   : > { %1285 = vrot.lane.b32.xlu1 %v2672_v10, %s2938_s7 }
 0x1a7   : > { %1655 = vrot.lane.b32.xlu0 %v2673_v16, %s2940_s23 }
 0x1a8   : > { %1350 = vrot.lane.b32.xlu1 %v2680_v30, %s2937_s26  ;;  %v1144_v18 = vpop.f32.mrf.mxu0 }
 0x1a9   : > { %v1145_v20 = vadd.f32 %v3422_v26, %v1144_v18  ;;  %v2855_v18 = vld [vmem:[%s3777_s2 + $0x80] sm:$0xff]  }
 0x1aa   : > { %v1146_v21 = vpop.f32.mrf.mxu0 }
 0x1ab   : > { %v1163_v22 = vmax.f32 %v1145_v20, 0.0  ;;  %1287 = vrot.lane.b32.xlu0 %v2673_v16, %s2938_s7 }
 0x1ac   : > { %1528 = vrot.lane.b32.xlu1 %v2681_v14, %s2938_s7  ;;  %v1147_v23 = vpop.f32.mrf.mxu0 }
 0x1ad   : > { %1194 = vst.msk [vmem:[#allocation4 + $0x51] sm:$0xff] %vm1167_vm12, %v1163_v22  ;;  %v1148_v17 = vadd.f32 %v3422_v26, %v1147_v23 }
 0x1ae   : > { %v1149_v24 = vpop.f32.mrf.mxu0 }
 0x1af   : > { %v1164_v27 = vmax.f32 %v1148_v17, 0.0  ;;  %1352 = vrot.lane.b32.xlu0 %v2681_v14, %s2937_s26 }
 0x1b0   : > { %1415 = vrot.lane.b32.xlu1 %v2665_v15, %s2940_s23 }
 0x1b1   : > { %1195 = vst.msk [vmem:[#allocation4 + $0x61] sm:$0xff] %vm1167_vm12, %v1164_v27 }
 0x1b4   : > { %v1686_v31 = vld [vmem:[#allocation4 + $0x52] sm:$0xff] }
 0x1b5   : > { %v1558_v33 = vld [vmem:[#allocation4 + $0x50] sm:$0xff]  ;;  %v2682_v34 = vpack.c.bf16 %v1686_v31, %v1686_v31 }
 0x1b6   : > { %v1622_v1 = vld [vmem:[#allocation4 + $0x51] sm:$0xff]  ;;  %v2666_v37 = vpack.c.bf16 %v1558_v33, %v1558_v33 }
 0x1b7   : > { %v2674_v38 = vpack.c.bf16 %v1622_v1, %v1622_v1  ;;  %1726 = vst.msk [vmem:[#allocation3 + $0x2c] sm:$0xf] %vm1238_vm14, %v2682_v34  ;;  %1530 = vrot.lane.b32.xlu0 %v2682_v34, %s2938_s7 }
 0x1b8   : > { %1593 = vrot.lane.b32.xlu1 %v2666_v37, %s2937_s26  ;;  %1244 = vst.msk [vmem:[#allocation3 + $0x3c] sm:$0xf] %vm1238_vm14, %v2666_v37  ;;  %v1687_v39 = vld [vmem:[#allocation4 + $0x62] sm:$0xff] }
 0x1b9   : > { %1486 = vst.msk [vmem:[#allocation3 + $0x34] sm:$0xf] %vm1238_vm14, %v2674_v38  ;;  %v1559_v40 = vld [vmem:[#allocation4 + $0x60] sm:$0xff]  ;;  %v2683_v44 = vpack.c.bf16 %v1687_v39, %v1687_v39 }
 0x1ba   : > { %v1623_v43 = vld [vmem:[#allocation4 + $0x61] sm:$0xff]  ;;  %v2667_v45 = vpack.c.bf16 %v1559_v40, %v1559_v40 }
 0x1bb   : > { %v2675_v46 = vpack.c.bf16 %v1623_v43, %v1623_v43  ;;  %1727 = vst.msk [vmem:[#allocation3 + $0x38] sm:$0xf] %vm1238_vm14, %v2683_v44  ;;  %1417 = vrot.lane.b32.xlu0 %v2666_v37, %s2940_s23 }
 0x1bc   : > { %1657 = vrot.lane.b32.xlu1 %v2674_v38, %s2940_s23  ;;  %1245 = vst.msk [vmem:[#allocation3 + $0x48] sm:$0xf] %vm1238_vm14, %v2667_v45 }
 0x1bd   : > { %1487 = vst.msk [vmem:[#allocation3 + $0x40] sm:$0xf] %vm1238_vm14, %v2675_v46 }
 0x1bf   : > { %1595 = vrot.lane.b32.xlu0 %v2667_v45, %s2937_s26 }
 0x1c0   : > { %1289 = vrot.lane.b32.xlu1 %v2674_v38, %s2938_s7 }
 0x1c2   : > { %v1152_v47 = vpop.f32.mrf.mxu0 }
 0x1c3   : > { %1659 = vrot.lane.b32.xlu0 %v2675_v46, %s2940_s23  ;;  %v1153_v48 = vadd.f32 %v3422_v26, %v1152_v47 }
 0x1c4   : > { %1354 = vrot.lane.b32.xlu1 %v2682_v34, %s2937_s26  ;;  %v1154_v49 = vpop.f32.mrf.mxu0 }
 0x1c5   : > { %v1165_v50 = vmax.f32 %v1153_v48, 0.0 }
 0x1c6   : > { %v1155_v51 = vpop.f32.mrf.mxu0 }
 0x1c7   : > { %1291 = vrot.lane.b32.xlu0 %v2675_v46, %s2938_s7  ;;  %1196 = vst.msk [vmem:[#allocation4 + $0x71] sm:$0xff] %vm1167_vm12, %v1165_v50  ;;  %v1156_v19 = vadd.f32 %v3422_v26, %v1155_v51 }
 0x1c8   : > { %1532 = vrot.lane.b32.xlu1 %v2683_v44, %s2938_s7  ;;  %v1157_v36 = vpop.f32.mrf.mxu0 }
 0x1c9   : > { %v1166_v52 = vmax.f32 %v1156_v19, 0.0 }
 0x1cb   : > { %1356 = vrot.lane.b32.xlu0 %v2683_v44, %s2937_s26  ;;  %1197 = vst.msk [vmem:[#allocation4 + $0x81] sm:$0xff] %vm1167_vm12, %v1166_v52 }
 0x1cc   : > { %1419 = vrot.lane.b32.xlu1 %v2667_v45, %s2940_s23 }
 0x1ce   : > { %v1688_v54 = vld [vmem:[#allocation4 + $0x72] sm:$0xff] }
 0x1cf   : > { %v1560_v55 = vld [vmem:[#allocation4 + $0x70] sm:$0xff]  ;;  %v2684_v56 = vpack.c.bf16 %v1688_v54, %v1688_v54 }
 0x1d0   : > { %v1624_v41 = vld [vmem:[#allocation4 + $0x71] sm:$0xff]  ;;  %v2668_v26 = vpack.c.bf16 %v1560_v55, %v1560_v55 }
 0x1d1   : > { %v2676_v57 = vpack.c.bf16 %v1624_v41, %v1624_v41  ;;  %1728 = vst.msk [vmem:[#allocation3 + $0x44] sm:$0xf] %vm1238_vm14, %v2684_v56  ;;  %1534 = vrot.lane.b32.xlu0 %v2684_v56, %s2938_s7 }
 0x1d2   : > { %1597 = vrot.lane.b32.xlu1 %v2668_v26, %s2937_s26  ;;  %1246 = vst.msk [vmem:[#allocation3 + $0x54] sm:$0xf] %vm1238_vm14, %v2668_v26  ;;  %v1689_v58 = vld [vmem:[#allocation4 + $0x82] sm:$0xff] }
 0x1d3   : > { %1488 = vst.msk [vmem:[#allocation3 + $0x4c] sm:$0xf] %vm1238_vm14, %v2676_v57  ;;  %v1625_v59 = vld [vmem:[#allocation4 + $0x81] sm:$0xff]  ;;  %v2685_v60 = vpack.c.bf16 %v1689_v58, %v1689_v58 }
 0x1d4   : > { %v2677_v61 = vpack.c.bf16 %v1625_v59, %v1625_v59  ;;  %v1561_v62 = vld [vmem:[#allocation4 + $0x80] sm:$0xff] }
 0x1d5   : > { %1729 = vst.msk [vmem:[#allocation3 + $0x50] sm:$0xf] %vm1238_vm14, %v2685_v60  ;;  %1421 = vrot.lane.b32.xlu0 %v2668_v26, %s2940_s23  ;;  %v2669_v63 = vpack.c.bf16 %v1561_v62, %v1561_v62  ;;  %v2860_v62 = vld [vmem:[#allocation3 + $0x20] ss:$12 sps:$4 sm:$0xff]  }
 0x1d6   : > { %1661 = vrot.lane.b32.xlu1 %v2676_v57, %s2940_s23  ;;  %1489 = vst.msk [vmem:[#allocation3 + $0x58] sm:$0xf] %vm1238_vm14, %v2677_v61 }
 0x1d9   : > { %1599 = vrot.lane.b32.xlu0 %v2669_v63, %s2937_s26 }
 0x1da   : > { %1293 = vrot.lane.b32.xlu1 %v2676_v57, %s2938_s7 }
 0x1dc   : > { %v2862_v0 = vld [vmem:[#allocation3 + $0x50] ss:$12 sps:$4 sm:$0xff]  }
 0x1dd   : > { %1663 = vrot.lane.b32.xlu0 %v2677_v61, %s2940_s23  ;;  %v2859_v61 = vld [vmem:[#allocation3 + $0x8] ss:$12 sps:$4 sm:$0xff]  }
 0x1de   : > { %1358 = vrot.lane.b32.xlu1 %v2684_v56, %s2937_s26 }
 0x1e2   : > { %1536 = vrot.lane.b32.xlu1 %v2685_v60, %s2938_s7  ;;  %s2388_s7 = sshll.u32 %s215_s30, 6 }
 0x1e3   : > { %s217_s16 = scalar_lea.vmem [#allocation5], %s2388_s7 }
 0x1e6   : > { %1423 = vrot.lane.b32.xlu1 %v2669_v63, %s2940_s23  ;;  %v2861_v63 = vld [vmem:[#allocation3 + $0x38] ss:$12 sps:$4 sm:$0xff]  }
 0x1ea   : > { %1665 = vrot.lane.b32.xlu1 %v2678_v2, %s2940_s23  ;;  %v2863_v2 = vld [vmem:[%s3778_s3] sm:$0xff]   ;;  %s2687_s23 = sshll.u32 %s2997_s22, 10  ;;  %s3735_s22 = scalar_lea.sflag [#allocation6], %s215_s30 }
 0x1eb   : > { %2751 = vmatprep.subr.bf16.mxu0 %v2863_v2  ;;  %s3721_s9 = scalar_lea.hbm %s3780_s5, %s2687_s23 }
 0x1ec   : > { %2752 = vmatpush3.bf16.msra.mxu0 %v2863_v2 }
 0x1ef   : > { %v1523_v32 = vpop.permute.xlu0 %1522 }
 0x1f0   : > { %v1282_v42 = vpop.permute.xlu1 %1281  ;;  %1546 = vst.msk [vmem:[#allocation3 + $0x4] sm:$0xf] %vm1303_vm15, %v1523_v32  ;;  %v2865_v32 = vld [vmem:[%s3037_s13 + $0xe8] ss:$8 sps:$4 sm:$0xff]  }
 0x1f1   : > { %1305 = vst.msk [vmem:[#allocation3 + $0xc] sm:$0xf] %vm1303_vm15, %v1282_v42  ;;  %v2866_v42 = vld [vmem:[%s3037_s13 + $0xf8] ss:$8 sps:$4 sm:$0xff]  }
 0x1f3   : > { %v1410_v4 = vpop.permute.xlu0 %1409 }
 0x1f4   : > { %v1347_v5 = vpop.permute.xlu1 %1346  ;;  %1434 = vst.msk [vmem:[#allocation3] sm:$0xf] %vm1433_vm1, %v1410_v4  ;;  %v2867_v4 = vld [vmem:[%s3037_s13 + $0x108] ss:$8 sps:$4 sm:$0xff]  }
 0x1f5   : > { %1370 = vst.msk [vmem:[#allocation3 + $0xc] sm:$0xf] %vm1368_vm0, %v1347_v5 }
 0x1f7   : > { %v1588_v6 = vpop.permute.xlu0 %1587 }
 0x1f8   : > { %v1525_v7 = vpop.permute.xlu1 %1524  ;;  %1611 = vst.msk [vmem:[#allocation3 + $0x4] sm:$0xf] %vm1368_vm0, %v1588_v6 }
 0x1f9   : > { %1547 = vst.msk [vmem:[#allocation3 + $0x10] sm:$0xf] %vm1303_vm15, %v1525_v7 }
 0x1fb   : > { %v1652_v29 = vpop.permute.xlu0 %1651 }
 0x1fc   : > { %v1412_v35 = vpop.permute.xlu1 %1411  ;;  %1675 = vst.msk [vmem:[#allocation3 + $0x4] sm:$0xf] %vm1433_vm1, %v1652_v29 }
 0x1fd   : > { %1435 = vst.msk [vmem:[#allocation3 + $0xc] sm:$0xf] %vm1433_vm1, %v1412_v35 }
 0x1ff   : > { %v1284_v8 = vpop.permute.xlu0 %1283 }
 0x200   : > { %1306 = vst.msk [vmem:[#allocation3 + $0x18] sm:$0xf] %vm1303_vm15, %v1284_v8 }
 0x203   : > { %v1349_v25 = vpop.permute.xlu0 %1348 }
 0x204   : > { %1371 = vst.msk [vmem:[#allocation3 + $0x18] sm:$0xf] %vm1368_vm0, %v1349_v25  ;;  %v2847_v15 = vld [vmem:[#allocation3] ss:$12 sps:$4 sm:$0xff]  }
 0x20d   : > { %v1527_v28 = vpop.permute.xlu0 %1526 }
 0x20e   : > { %v1590_v30 = vpop.permute.xlu1 %1589  ;;  %1548 = vst.msk [vmem:[#allocation3 + $0x1c] sm:$0xf] %vm1303_vm15, %v1527_v28 }
 0x20f   : > { %1612 = vst.msk [vmem:[#allocation3 + $0x10] sm:$0xf] %vm1368_vm0, %v1590_v30 }
 0x211   : > { %v1414_v9 = vpop.permute.xlu0 %1413 }
 0x212   : > { %v1654_v10 = vpop.permute.xlu1 %1653  ;;  %1436 = vst.msk [vmem:[#allocation3 + $0x18] sm:$0xf] %vm1433_vm1, %v1414_v9 }
 0x213   : > { %1676 = vst.msk [vmem:[#allocation3 + $0x10] sm:$0xf] %vm1433_vm1, %v1654_v10 }
 0x215   : > { %v1592_v11 = vpop.permute.xlu0 %1591 }
 0x216   : > { %v1286_v12 = vpop.permute.xlu1 %1285  ;;  %1613 = vst.msk [vmem:[#allocation3 + $0x1c] sm:$0xf] %vm1368_vm0, %v1592_v11 }
 0x217   : > { %1307 = vst.msk [vmem:[#allocation3 + $0x24] sm:$0xf] %vm1303_vm15, %v1286_v12 }
 0x219   : > { %v1656_v13 = vpop.permute.xlu0 %1655 }
 0x21a   : > { %v1351_v14 = vpop.permute.xlu1 %1350  ;;  %v2849_v16 = vld [vmem:[#allocation3 + $0x4] ss:$12 sps:$4 sm:$0xff]   ;;  %1677 = vst.msk [vmem:[#allocation3 + $0x1c] sm:$0xf] %vm1433_vm1, %v1656_v13 }
 0x21b   : > { %1372 = vst.msk [vmem:[#allocation3 + $0x24] sm:$0xf] %vm1368_vm0, %v1351_v14  ;;  %2000 = vmatprep.mubr.bf16.mxu1 %v2849_v16 }
 0x21c   : > { %2001 = vmatmul.mubr.bf16.vlgmr.msra.gmra.mxu1 %v2847_v15 }
 0x21d   : > { %v1288_v20 = vpop.permute.xlu0 %1287  ;;  %2740 = vmatpush3.bf16.msra.mxu1 %v3543_v53 }
 0x21e   : > { %v1529_v21 = vpop.permute.xlu1 %1528  ;;  %1308 = vst.msk [vmem:[#allocation3 + $0x30] sm:$0xf] %vm1303_vm15, %v1288_v20  ;;  %2741 = vmatprep.subr.bf16.mxu1 %v2855_v18 }
 0x21f   : > { %1549 = vst.msk [vmem:[#allocation3 + $0x28] sm:$0xf] %vm1303_vm15, %v1529_v21 }
 0x221   : > { %v1353_v22 = vpop.permute.xlu0 %1352  ;;  %2742 = vmatpush3.bf16.msra.mxu1 %v2855_v18  ;;  %v1735_v38 = vld [vmem:[#allocation3 + $0x18] sm:$0xff]  ;;  %v2556_v18 = vld [vmem:[%s3779_s4 + $0x1] ss:$0 sm:$0xff] }
 0x222   : > { %v1416_v23 = vpop.permute.xlu1 %1415  ;;  %1373 = vst.msk [vmem:[#allocation3 + $0x30] sm:$0xf] %vm1368_vm0, %v1353_v22 }
 0x223   : > { %1437 = vst.msk [vmem:[#allocation3 + $0x24] sm:$0xf] %vm1433_vm1, %v1416_v23 }
 0x229   : > { %v1531_v17 = vpop.permute.xlu0 %1530 }
 0x22a   : > { %v1594_v24 = vpop.permute.xlu1 %1593  ;;  %1550 = vst.msk [vmem:[#allocation3 + $0x34] sm:$0xf] %vm1303_vm15, %v1531_v17 }
 0x22b   : > { %1614 = vst.msk [vmem:[#allocation3 + $0x28] sm:$0xf] %vm1368_vm0, %v1594_v24 }
 0x22d   : > { %v1418_v27 = vpop.permute.xlu0 %1417 }
 0x22e   : > { %v1658_v31 = vpop.permute.xlu1 %1657  ;;  %1438 = vst.msk [vmem:[#allocation3 + $0x30] sm:$0xf] %vm1433_vm1, %v1418_v27 }
 0x22f   : > { %1678 = vst.msk [vmem:[#allocation3 + $0x28] sm:$0xf] %vm1433_vm1, %v1658_v31 }
 0x231   : > { %v1596_v33 = vpop.permute.xlu0 %1595 }
 0x232   : > { %v1290_v1 = vpop.permute.xlu1 %1289  ;;  %1615 = vst.msk [vmem:[#allocation3 + $0x34] sm:$0xf] %vm1368_vm0, %v1596_v33 }
 0x233   : > { %1309 = vst.msk [vmem:[#allocation3 + $0x3c] sm:$0xf] %vm1303_vm15, %v1290_v1 }
 0x235   : > { %v1660_v34 = vpop.permute.xlu0 %1659 }
 0x236   : > { %v1355_v37 = vpop.permute.xlu1 %1354  ;;  %v1737_v39 = vld [vmem:[#allocation3 + $0x24] sm:$0xff]  ;;  %1679 = vst.msk [vmem:[#allocation3 + $0x34] sm:$0xf] %vm1433_vm1, %v1660_v34 }
 0x237   : > { %v2850_v40 = vld [vmem:[#allocation3 + $0x1c] ss:$12 sps:$4 sm:$0xff]   ;;  %1374 = vst.msk [vmem:[#allocation3 + $0x3c] sm:$0xf] %vm1368_vm0, %v1355_v37  ;;  %v2560_v43 = vcombine.low %v1735_v38, %v1737_v39 }
 0x238   : > { %2008 = vmatprep.mubr.bf16.mxu1 %v2850_v40 }
 0x239   : > { %2009 = vmatmul.mubr.bf16.gmra.mxu1 %v2560_v43  ;;  %v1292_v44 = vpop.permute.xlu0 %1291 }
 0x23a   : > { %v1533_v45 = vpop.permute.xlu1 %1532  ;;  %1310 = vst.msk [vmem:[#allocation3 + $0x48] sm:$0xf] %vm1303_vm15, %v1292_v44 }
 0x23b   : > { %1551 = vst.msk [vmem:[#allocation3 + $0x40] sm:$0xf] %vm1303_vm15, %v1533_v45 }
 0x23d   : > { %v1357_v46 = vpop.permute.xlu0 %1356  ;;  %v1739_v54 = vld [vmem:[#allocation3 + $0x30] sm:$0xff] }
 0x23e   : > { %v1420_v47 = vpop.permute.xlu1 %1419  ;;  %1375 = vst.msk [vmem:[#allocation3 + $0x48] sm:$0xf] %vm1368_vm0, %v1357_v46 }
 0x23f   : > { %1439 = vst.msk [vmem:[#allocation3 + $0x3c] sm:$0xf] %vm1433_vm1, %v1420_v47 }
 0x243   : > { %v1535_v48 = vpop.permute.xlu0 %1534 }
 0x244   : > { %v1598_v49 = vpop.permute.xlu1 %1597  ;;  %1552 = vst.msk [vmem:[#allocation3 + $0x4c] sm:$0xf] %vm1303_vm15, %v1535_v48 }
 0x245   : > { %1616 = vst.msk [vmem:[#allocation3 + $0x40] sm:$0xf] %vm1368_vm0, %v1598_v49 }
 0x247   : > { %v1422_v50 = vpop.permute.xlu0 %1421 }
 0x248   : > { %v1662_v51 = vpop.permute.xlu1 %1661  ;;  %1440 = vst.msk [vmem:[#allocation3 + $0x48] sm:$0xf] %vm1433_vm1, %v1422_v50 }
 0x249   : > { %1680 = vst.msk [vmem:[#allocation3 + $0x40] sm:$0xf] %vm1433_vm1, %v1662_v51 }
 0x24b   : > { %v1600_v19 = vpop.permute.xlu0 %1599 }
 0x24c   : > { %v1294_v36 = vpop.permute.xlu1 %1293  ;;  %1617 = vst.msk [vmem:[#allocation3 + $0x4c] sm:$0xf] %vm1368_vm0, %v1600_v19 }
 0x24d   : > { %1311 = vst.msk [vmem:[#allocation3 + $0x54] sm:$0xf] %vm1303_vm15, %v1294_v36 }
 0x24f   : > { %v1664_v52 = vpop.permute.xlu0 %1663 }
 0x250   : > { %v1359_v53 = vpop.permute.xlu1 %1358  ;;  %v1741_v55 = vld [vmem:[#allocation3 + $0x3c] sm:$0xff]  ;;  %1681 = vst.msk [vmem:[#allocation3 + $0x4c] sm:$0xf] %vm1433_vm1, %v1664_v52 }
 0x251   : > { %v2853_v41 = vld [vmem:[#allocation3 + $0x34] ss:$12 sps:$4 sm:$0xff]   ;;  %1376 = vst.msk [vmem:[#allocation3 + $0x54] sm:$0xf] %vm1368_vm0, %v1359_v53  ;;  %v2563_v56 = vcombine.low %v1739_v54, %v1741_v55 }
 0x252   : > { %2016 = vmatprep.mubr.bf16.mxu1 %v2853_v41 }
 0x253   : > { %2017 = vmatmul.mubr.bf16.gmra.mxu1 %v2563_v56 }
 0x254   : > { %v1537_v26 = vpop.permute.xlu1 %1536 }
 0x255   : > { %1553 = vst.msk [vmem:[#allocation3 + $0x58] sm:$0xf] %vm1303_vm15, %v1537_v26 }
 0x256   : > { %1618 = vst.msk [vmem:[#allocation3 + $0x58] sm:$0xf] %vm1368_vm0, %v3562_v3  ;;  %v2864_v3 = vld [vmem:[%s3037_s13 + $0xd8] ss:$8 sps:$4 sm:$0xff]   ;;  %s2322_s13 = sshll.u32 %s217_s16, 4  ;;  %s3723_s13 = int_to_ptr.vmem [resolvable:$true] %s2322_s13 }
 0x257   : > { %2753 = vmatprep.mubr.msk.bf16.mxu0 %vm1081_vm11, %v2864_v3  ;;  %s2872_s10 = scalar_lea.vmem %s3723_s13, 1024  ;;  %p2879_p0 = scmp.lt.s32.totalorder %s3723_s13, %s2877_s12 }
 0x258   : > { %v1424_v57 = vpop.permute.xlu1 %1423  ;;  %2754 = vmatmul.mubr.msk.bf16.vlgmr.msra.gmra.mxu0 %vm1081_vm11, %v2865_v32  ;;  %p2873_p11 = scmp.ne.s32.totalorder %s3723_s13, %s2872_s10  ;;  %p2880_p1 = scmp.lt.s32.totalorder %s2878_s14, %s2872_s10 }
 0x259   : > { %1441 = vst.msk [vmem:[#allocation3 + $0x54] sm:$0xf] %vm1433_vm1, %v1424_v57  ;;  %2757 = vmatprep.mubr.msk.bf16.mxu0 %vm1081_vm11, %v2866_v42 }
 0x25a   : > { %p2874_p12 = pnand %p2873_p11, %p3014_p5  ;;  %p2881_p2 = por %p2880_p1, %p2879_p0 }
 0x25c   : > { %v1666_v58 = vpop.permute.xlu1 %1665  ;;  %p2875_p13 = pneg %p2874_p12 }
 0x25d   : > { %1682 = vst.msk [vmem:[#allocation3 + $0x58] sm:$0xf] %vm1433_vm1, %v1666_v58 }
 0x25e   : > { %p2882_p3 = pnand %p2881_p2, %p2875_p13 }
 0x260   : > { %v2858_v60 = vld [vmem:[#allocation3 + $0x48] ss:$12 sps:$4 sm:$0xff]   ;;  %2758 = vmatmul.mubr.msk.bf16.gmra.mxu0 %vm1081_vm11, %v2867_v4 }
 0x264   : > { %v2856_v59 = vld [vmem:[#allocation3 + $0x4c] ss:$12 sps:$4 sm:$0xff]  }
 0x265   : > { %2024 = vmatprep.mubr.bf16.mxu1 %v2856_v59 }
 0x266   : > { %2025 = vmatmul.mubr.bf16.gmra.mxu1 %v2858_v60 }
 0x267   : > { %2743 = vmatprep.mubr.msk.bf16.mxu1 %vm1167_vm12, %v2859_v61 }
 0x26e   : > { %2744 = vmatmul.mubr.msk.bf16.vlgmr.msra.gmra.mxu1 %vm1167_vm12, %v2860_v62 }
 0x26f   : > { %2747 = vmatprep.mubr.msk.bf16.mxu1 %vm1167_vm12, %v2861_v63 }
 0x276   : > { %2748 = vmatmul.mubr.msk.bf16.gmra.mxu1 %vm1167_vm12, %v2862_v0 }
 0x2dc   : > { %v2704_v5 = vpop.f32.mrf.mxu1 }
 0x2de   : > { %v2705_v6 = vpop.f32.mrf.mxu1 }
 0x2df   : > { %v2706_v15 = vadd.f32 %v2705_v6, %v2704_v5 }
 0x2e0   : > { %v2707_v7 = vpop.f32.mrf.mxu1 }
 0x2e1   : > { %v2003_v17 = vadd.f32 %v2706_v15, %v2556_v18 }
 0x2e2   : > { %v2708_v29 = vpop.f32.mrf.mxu1 }
 0x2e3   : > { %v2709_v22 = vadd.f32 %v2708_v29, %v2707_v7 }
 0x2e5   : > { %v2006_v38 = vadd.f32 %v2709_v22, %v2556_v18 }
 0x2f9   : > { %v2710_v35 = vpop.f32.mrf.mxu1 }
 0x2fb   : > { %v2711_v8 = vpop.f32.mrf.mxu1 }
 0x2fc   : > { %v2712_v20 = vadd.f32 %v2711_v8, %v2710_v35 }
 0x2fd   : > { %v2713_v25 = vpop.f32.mrf.mxu1 }
 0x2fe   : > { %v2011_v27 = vadd.f32 %v2712_v20, %v2556_v18  ;;  %v2249_v20 = vld [vmem:[%s3779_s4 + $0x7] sm:$0x3] }
 0x2ff   : > { %v2714_v28 = vpop.f32.mrf.mxu1 }
 0x300   : > { %v2715_v23 = vadd.f32 %v2714_v28, %v2713_v25 }
 0x302   : > { %v2014_v37 = vadd.f32 %v2715_v23, %v2556_v18  ;;  %v2248_v23 = vld [vmem:[%s3779_s4 + $0x5] sm:$0x3] }
 0x313   : > { %v2716_v30 = vpop.f32.mrf.mxu1 }
 0x315   : > { %v2717_v9 = vpop.f32.mrf.mxu1 }
 0x316   : > { %v2718_v1 = vadd.f32 %v2717_v9, %v2716_v30 }
 0x317   : > { %v2719_v10 = vpop.f32.mrf.mxu1 }
 0x318   : > { %v2019_v51 = vadd.f32 %v2718_v1, %v2556_v18 }
 0x319   : > { %v2720_v11 = vpop.f32.mrf.mxu1 }
 0x31a   : > { %v2721_v46 = vadd.f32 %v2720_v11, %v2719_v10 }
 0x31c   : > { %v2022_v26 = vadd.f32 %v2721_v46, %v2556_v18 }
 0x326   : > { %v2722_v12 = vpop.f32.mrf.mxu1 }
 0x328   : > { %v2723_v13 = vpop.f32.mrf.mxu1 }
 0x329   : > { %v2724_v39 = vadd.f32 %v2723_v13, %v2722_v12 }
 0x32a   : > { %v2725_v14 = vpop.f32.mrf.mxu1 }
 0x32b   : > { %v2027_v19 = vadd.f32 %v2724_v39, %v2556_v18 }
 0x32c   : > { %v2726_v16 = vpop.f32.mrf.mxu1 }
 0x32d   : > { %v2727_v48 = vadd.f32 %v2726_v16, %v2725_v14  ;;  %v2247_v14 = vld [vmem:[%s3779_s4 + $0x3] sm:$0x3] }
 0x32e   : > { %v2745_v21 = vpop.f32.mrf.mxu1 }
 0x32f   : > { %v3635_v34 = vadd.f32 %v2745_v21, %v2011_v27  ;;  %v2030_v60 = vadd.f32 %v2727_v48, %v2556_v18 }
 0x330   : > { %v2067_v24 = vpop.f32.mrf.mxu1 }
 0x331   : > { %v3633_v31 = vadd.f32 %v2067_v24, %v2003_v17  ;;  %v2100_v49 = vmax.f32 %v3635_v34, 0.0 }
 0x332   : > { %v2746_v33 = vpop.f32.mrf.mxu1 }
 0x333   : > { %v2098_v43 = vmax.f32 %v3633_v31, 0.0  ;;  %v3638_v44 = vadd.f32 %v2746_v33, %v2014_v37  ;;  %v2227_v57 = vsel %vm1167_vm12, %v2100_v49, 0.0 }
 0x334   : > { %v2070_v40 = vpop.f32.mrf.mxu1 }
 0x335   : > { %v3640_v45 = vadd.f32 %v2070_v40, %v2006_v38  ;;  %v2224_v52 = vsel %vm1167_vm12, %v2098_v43, 0.0  ;;  %v2101_v53 = vmax.f32 %v3638_v44, 0.0  ;;  %v2250_v40 = vld [vmem:[%s3779_s4 + $0x9] sm:$0x1] }
 0x336   : > { %v2749_v47 = vpop.f32.mrf.mxu1 }
 0x337   : > { %v2099_v50 = vmax.f32 %v3640_v45, 0.0  ;;  %v3656_v58 = vadd.f32 %v2749_v47, %v2027_v19  ;;  %v2229_v63 = vsel %vm1167_vm12, %v2101_v53, 0.0 }
 0x338   : > { %v2083_v36 = vpop.f32.mrf.mxu1 }
 0x339   : > { %v2225_v54 = vsel %vm1167_vm12, %v2099_v50, 0.0  ;;  %v3651_v55 = vadd.f32 %v2083_v36, %v2019_v51  ;;  %v2104_v32 = vmax.f32 %v3656_v58, 0.0  ;;  %v2755_v51 = vpop.f32.mrf.mxu0 }
 0x33a   : > { %v2226_v41 = vadd.f32 %v2225_v54, %v2224_v52  ;;  %v2750_v56 = vpop.f32.mrf.mxu1 }
 0x33b   : > { %v2102_v59 = vmax.f32 %v3651_v55, 0.0  ;;  %v3662_v0 = vadd.f32 %v2750_v56, %v2030_v60  ;;  %v2235_v35 = vsel %vm1167_vm12, %v2104_v32, 0.0  ;;  %v2193_v19 = vpop.f32.mrf.mxu0 }
 0x33c   : > { %v2228_v61 = vadd.f32 %v2227_v57, %v2226_v41  ;;  %v2086_v62 = vpop.f32.mrf.mxu1 }
 0x33d   : > { %v3664_v2 = vadd.f32 %v2086_v62, %v2022_v26  ;;  %v2231_v42 = vsel %vm1167_vm12, %v2102_v59, 0.0  ;;  %v2105_v6 = vmax.f32 %v3662_v0, 0.0  ;;  %v2756_v36 = vpop.f32.mrf.mxu0  ;;  %v2272_v26 = vlaneseq }
 0x33e   : > { %v2230_v3 = vadd.f32 %v2229_v63, %v2228_v61  ;;  %v2599_v63 = vld [vmem:[%s3779_s4 + $0x2] ss:$0 sm:$0xff] }
 0x33f   : > { %v2103_v4 = vmax.f32 %v3664_v2, 0.0  ;;  %v2237_v25 = vsel %vm1167_vm12, %v2105_v6, 0.0  ;;  %v2196_v52 = vpop.f32.mrf.mxu0  ;;  %v2273_v60 = vshrl.u32 %v2272_v26, 7 }
 0x340   : > { %v2232_v5 = vadd.f32 %v2231_v42, %v2230_v3 }
 0x341   : > { %v2233_v7 = vsel %vm1167_vm12, %v2103_v4, 0.0  ;;  %v2759_v56 = vpop.f32.mrf.mxu0  ;;  %v2274_v62 = vsub.s32 0, %v2273_v60 }
 0x342   : > { %v2234_v29 = vadd.f32 %v2233_v7, %v2232_v5  ;;  %v2202_v5 = vadd.f32 %v2755_v51, %v2599_v63 }
 0x343   : > { %v2209_v57 = vpop.f32.mrf.mxu0 }
 0x344   : > { %v2236_v8 = vadd.f32 %v2235_v35, %v2234_v29  ;;  %v2194_v29 = vadd.f32 %v2599_v63, %v2193_v19  ;;  %v2205_v35 = vadd.f32 %v2756_v36, %v2599_v63 }
 0x345   : > { %v2760_v61 = vpop.f32.mrf.mxu0 }
 0x346   : > { %v2238_v28 = vadd.f32 %v2237_v25, %v2236_v8  ;;  %v2197_v8 = vadd.f32 %v2599_v63, %v2196_v52  ;;  %v2218_v25 = vadd.f32 %v2759_v56, %v2599_v63 }
 0x347   : > { %v2212_v3 = vpop.f32.mrf.mxu0 }
 0x348   : > { %v2239_v30 = vrot.slane %v2238_v28, 4 }
 0x34a   : > { %v2240_v9 = vadd.f32 %v2239_v30, %v2238_v28  ;;  %v2210_v28 = vadd.f32 %v2599_v63, %v2209_v57  ;;  %v2221_v30 = vadd.f32 %v2760_v61, %v2599_v63 }
 0x34c   : > { %v2241_v10 = vrot.slane %v2240_v9, 2 }
 0x34e   : > { %v2242_v11 = vadd.f32 %v2241_v10, %v2240_v9  ;;  %v2213_v9 = vadd.f32 %v2599_v63, %v2212_v3 }
 0x350   : > { %v2243_v12 = vrot.slane %v2242_v11, 1 }
 0x352   : > { %v2244_v13 = vadd.f32 %v2243_v12, %v2242_v11 }
 0x354   : > { %v2246_v15 = vmul.f32 0.015625, %v2244_v13 }
 0x356   : > { %v2251_v16 = vmul.f32 %v2247_v14, %v2246_v15 }
 0x358   : > { %v2252_v18 = vsel %vm1169_vm13, %v2251_v16, 0.0 }
 0x359   : > { %2253 = vadd.xlane.f32.xlu0 %v2252_v18 }
 0x3e2   : > { %v2254_v21 = vpop.xlane.xlu0 %2253 }
 0x3e3   : > { %v2255_v22 = vadd.f32 %v2254_v21, %v2249_v20 }
 0x3e5   : > { %v2256_v17 = vmax.f32 %v2255_v22, 0.0 }
 0x3e7   : > { %v2257_v24 = vmul.f32 %v2256_v17, %v2248_v23 }
 0x3e9   : > { %v2258_v27 = vsel %vm1169_vm13, %v2257_v24, 0.0 }
 0x3ea   : > { %v2259_v33 = vrot.slane %v2258_v27, 4 }
 0x3ec   : > { %v2260_v1 = vadd.f32 %v2259_v33, %v2258_v27 }
 0x3ee   : > { %v2261_v37 = vrot.slane %v2260_v1, 2 }
 0x3f0   : > { %v2262_v38 = vadd.f32 %v2261_v37, %v2260_v1 }
 0x3f2   : > { %v2263_v39 = vrot.slane %v2262_v38, 1 }
 0x3f4   : > { %v2264_v46 = vadd.f32 %v2263_v39, %v2262_v38 }
 0x3f6   : > { %v2265_v47 = vadd.f32 %v2264_v46, %v2250_v40 }
 0x3f8   : > { %v2609_v48 = vmul.f32 -1.442695, %v2265_v47 }
 0x3fa   : > { %2868 = vpow2.f32 %v2609_v48 }
 0x407   : > { %v2869_v54 = vpop.eup %2868 }
 0x408   : > { %v2269_v41 = vadd.f32 1.0, %v2869_v54 }
 0x40a   : > { %2870 = vrcp.f32 %v2269_v41 }
 0x417   : > { %v2871_v42 = vpop.eup %2870 }
 0x418   : > { %v2275_v7 = vrot.slane %v2871_v42, %v2274_v62 }
 0x41a   : > { %v2278_v10 = vmul.f32 %v2275_v7, %v2100_v49  ;;  %v2276_v11 = vmul.f32 %v2275_v7, %v2098_v43  ;;  %v2279_v12 = vmul.f32 %v2275_v7, %v2101_v53  ;;  %v2277_v13 = vmul.f32 %v2275_v7, %v2099_v50 }
 0x41b   : > { %v2282_v14 = vmul.f32 %v2275_v7, %v2104_v32  ;;  %v2280_v15 = vmul.f32 %v2275_v7, %v2102_v59  ;;  %v2283_v16 = vmul.f32 %v2275_v7, %v2105_v6  ;;  %v2281_v34 = vmul.f32 %v2275_v7, %v2103_v4 }
 0x41c   : > { %v2286_v31 = vadd.f32 %v2278_v10, %v2202_v5  ;;  %v2284_v43 = vadd.f32 %v2276_v11, %v2194_v29  ;;  %v2287_v44 = vadd.f32 %v2279_v12, %v2205_v35  ;;  %v2285_v45 = vadd.f32 %v2277_v13, %v2197_v8 }
 0x41d   : > { %v2290_v49 = vadd.f32 %v2282_v14, %v2218_v25  ;;  %v2288_v50 = vadd.f32 %v2280_v15, %v2210_v28  ;;  %v2291_v53 = vadd.f32 %v2283_v16, %v2221_v30  ;;  %v2289_v58 = vadd.f32 %v2281_v34, %v2213_v9 }
 0x41e   : > { %v2294_v32 = vmax.f32 %v2286_v31, 0.0  ;;  %v2292_v55 = vmax.f32 %v2284_v43, 0.0  ;;  %v2295_v59 = vmax.f32 %v2287_v44, 0.0  ;;  %v2293_v0 = vmax.f32 %v2285_v45, 0.0 }
 0x41f   : > { %v2298_v2 = vmax.f32 %v2290_v49, 0.0  ;;  %v2296_v4 = vmax.f32 %v2288_v50, 0.0  ;;  %v2299_v6 = vmax.f32 %v2291_v53, 0.0  ;;  %v2297_v18 = vmax.f32 %v2289_v58, 0.0 }
 0x420   : > { %2302 = vst.msk [vmem:[%s217_s16 + $0x10] sm:$0xff] %vm1167_vm12, %v2294_v32  ;;  %2300 = vst.msk [vmem:[%s217_s16] sm:$0xff] %vm1167_vm12, %v2292_v55 }
 0x421   : > { %2303 = vst.msk [vmem:[%s217_s16 + $0x18] sm:$0xff] %vm1167_vm12, %v2295_v59  ;;  %2301 = vst.msk [vmem:[%s217_s16 + $0x8] sm:$0xff] %vm1167_vm12, %v2293_v0 }
 0x422   : > { %2306 = vst.msk [vmem:[%s217_s16 + $0x30] sm:$0xff] %vm1167_vm12, %v2298_v2  ;;  %2304 = vst.msk [vmem:[%s217_s16 + $0x20] sm:$0xff] %vm1167_vm12, %v2296_v4 }
 0x423   : > { %2307 = vst.msk [vmem:[%s217_s16 + $0x38] sm:$0xff] %vm1167_vm12, %v2299_v6  ;;  %2305 = vst.msk [vmem:[%s217_s16 + $0x28] sm:$0xff] %vm1167_vm12, %v2297_v18 }
 0x424   : > { %2885 = shalt.err (!%p2882_p3)
}
 0x425   : > { %s2886_s15 = scalar_lea.hbm %s3721_s9, 1024  ;;  %s2890_s6 = scalar_lea.hbm %s3780_s5, 2048 }
 0x426   : > { %p2887_p4 = scmp.ne.s32.totalorder %s3721_s9, %s2886_s15  ;;  %p2891_p9 = scmp.lt.s32.totalorder %s3721_s9, %s3780_s5 }
 0x427   : > { %p2892_p10 = scmp.lt.s32.totalorder %s2890_s6, %s2886_s15 }
 0x428   : > { %p2888_p7 = pnand %p2887_p4, %p3014_p5 }
 0x429   : > { %p2893_p11 = por %p2892_p10, %p2891_p9 }
 0x42a   : > { %p2889_p8 = pneg %p2888_p7 }
 0x42c   : > { %p2894_p12 = pnand %p2893_p11, %p2889_p8 }
 0x42e   : > { %2897 = shalt.err (!%p2894_p12)
}
 0x42f   : > { %s2944_s23 = smov 128   ;;  %s2945_s16 = smov 8  }
 0x430   : > { %2762 = dma.vmem_to_hbm [thread:$0]  (%p3014_p5), %s3723_s13, 1024, %s3721_s9, %s3735_s22, %s2944_s23, %s2944_s23, %s2945_s16  }
 0x431 PF: > { %p2768_p13 = scmp.ge.s32.totalorder %s2932_s21, 2  ;;  %s2337_s17 = sand.u32 1, %s2920_s18  }
 0x432   : > { %s2338_s8 = scalar_lea.sflag [#allocation6], %s2337_s17 }
 0x433   : > { %p2765_p0 = pnand %p2768_p13, %p3018_p6 }
 0x435   : > { %p2766_p1 = pneg %p2765_p0 }
 0x437   : > { %2915 = dma.done.wait (%p2766_p1), %s2338_s8, 1024  }
 0x438   : > { %2917 = vsyncadd (%p2766_p1), %s2338_s8, 4294966272  ;;  %p15_p2 = scmp.ge.s32.totalorder %s3001_s24, 4   ;;  %s3785_s18 = smov %s2924_s19 }
 0x439   : > { %s3786_s19 = smov %s2928_s20  ;;  %s3787_s20 = smov %s3012_s27 }
 0x43a   : > { %s3788_s21 = smov %s3001_s24  ;;  %17 = sbr.rel (!%p15_p2) target bundleno = 3 (0x3), region = 82 }
 0x43f   :  { %2343 = vsyncpa [#allocation6], 1 }
 0x440   :  { %2345 = vsyncpa [#allocation6 + $0x1], 1 }

</bundles_post_ra>
